<compile_context>
chip_gen: v5e
topology: v5e:2x2
jax: 0.10.0
libtpu: 0.0.40
codegen_flags: <defaults>
</compile_context>

<pallas_src>
import jax
import jax.numpy as jnp
from jax.experimental import pallas as pl
from jax.experimental.pallas import tpu as pltpu


def _round_up(x, m):
    return (x + m - 1) // m * m


def modgru_kernel(
    mask_ref,      # [T, Bb, 128] f32   (per-row mask replicated across lanes)
    gin_ref,       # [T, Bb, 3*Hp] bf16 input-side gate pre-activations (r|z|n)
    hx0_ref,       # [Bb, Hp] f32
    whh3_ref,      # [Hp, 3*Hp] bf16    fused [Whr | Whz | Whn]
    bhn_ref,       # [1, Hp] f32        hidden bias of the n gate only
    hseq_ref,      # [T, Bb, Hp] bf16   per-step hidden states (output)
    hxout_ref,     # [Bb, Hp] f32       final hidden state (output)
    hx_scr,        # VMEM [Bb, Hp] f32  hidden-state carry across time chunks
):
    c = pl.program_id(1)   # time-chunk index ("arbitrary" axis)

    @pl.when(c == 0)
    def _():
        hx_scr[...] = hx0_ref[...]

    T = gin_ref.shape[0]
    Hp = hxout_ref.shape[-1]

    # Weights are small and loop-invariant; load once per grid step.
    whh3 = whh3_ref[...]          # bf16
    bhn = bhn_ref[...]            # f32

    def step(t, hx):
        gin = gin_ref[t].astype(jnp.float32)    # [Bb, 3Hp]
        mcol = mask_ref[t][:, 0:1]              # [Bb, 1] -> broadcasts over Hp
        # One fused bf16 hidden-state matmul for all three gates, f32 accumulate.
        hh = jnp.dot(hx.astype(jnp.bfloat16), whh3,
                     preferred_element_type=jnp.float32)        # [Bb, 3Hp]
        # r and z share one merged sigmoid over the contiguous first 2*Hp lanes.
        rz = jax.nn.sigmoid(gin[:, :2 * Hp] + hh[:, :2 * Hp])
        r = rz[:, :Hp]
        z = rz[:, Hp:]
        n = jnp.tanh(gin[:, 2 * Hp:] + r * (hh[:, 2 * Hp:] + bhn))
        hx_cell = (1.0 - z) * n + z * hx
        # hx = _hx * mask + hx * (1 - mask)  ==  hx + mask * (_hx - hx)
        hx_new = hx + mcol * (hx_cell - hx)
        hseq_ref[t] = hx_new.astype(hseq_ref.dtype)
        return hx_new

    hx_final = jax.lax.fori_loop(0, T, step, hx_scr[...], unroll=4)
    hx_scr[...] = hx_final

    @pl.when(c == pl.num_programs(1) - 1)
    def _():
        hxout_ref[...] = hx_final


def _vmem_limit_bytes(T, Bb, Hp):
    # Double-buffered streams: mask(f32,128 lanes) + gin(bf16,3Hp) + hseq(bf16,Hp)
    stream = 2 * T * Bb * (128 * 4 + 3 * Hp * 2 + Hp * 2)
    weights = 2 * (Hp * 3 * Hp * 2 + Hp * 4)                 # whh3 + bhn
    resident = 2 * 2 * Bb * Hp * 4 + Bb * Hp * 4             # hx0 + hxout + scratch
    need = stream + weights + resident
    # NOTE: on v7x (64 MiB VMEM) shrink `chunk` so this stays well under 48 MiB.
    return int(min(100 * (1 << 20), max(32 * (1 << 20), int(need * 1.5) + (4 << 20))))


def modgru_forward(X, hx, mask, params, *, chunk=32, batch_split=None):
    """X: [S, B, D], hx: [B, H], mask: [S, B] float.

    Returns (output [S, B, H], hx_final [B, H]) matching the PyTorch forward
    with M=None.
    """
    S, B, D = X.shape
    H = hx.shape[1]
    (wcx, wcm, bc, wir, wiz, win, whr, whz, whn,
     br, bz, bin_, bhn, woc, woh, bo) = params

    f32, bf16 = jnp.float32, jnp.bfloat16
    X = X.astype(f32)
    hx = hx.astype(f32)

    # ---- Hoisted non-recurrent work (one fused XLA matmul) -------------------
    # M = ones  =>  ones @ wcm == column-sum of wcm  -> fold into bias.
    bc_eff = bc + jnp.sum(wcm, axis=0, keepdims=True)               # [1, D]
    # comb = X@wcx + bc_eff only feeds (wir, wiz, win, woc): fold wcx through.
    w_post = jnp.concatenate([wir, wiz, win, woc], axis=1)          # [D, 4H]
    b_post = jnp.concatenate([br, bz, bin_, bo], axis=1)            # [1, 4H]
    wg = wcx @ w_post                                               # [D, 4H]
    bg = bc_eff @ w_post + b_post                                   # [1, 4H]
    g = jnp.einsum('sbd,dh->sbh', X, wg) + bg                       # [S, B, 4H]
    gin_r = g[..., 0:H]
    gin_z = g[..., H:2 * H]
    gin_n = g[..., 2 * H:3 * H]
    out_pre = g[..., 3 * H:4 * H]                                   # comb@woc + bo

    # ---- Pad to TPU-friendly shapes ------------------------------------------
    Hp = _round_up(H, 128)
    if batch_split is None:
        batch_split = 2 if _round_up(B, 16) >= 32 else 1            # v7x: 2 TCs
    Bp = _round_up(B, 16 * batch_split)                              # bf16 tile: 16
    Bb = Bp // batch_split
    T = min(chunk, S)
    Sp = _round_up(S, T)
    n_chunks = Sp // T

    def pad3(a, s, b, h):
        return jnp.pad(a, ((0, s - a.shape[0]),
                           (0, b - a.shape[1]),
                           (0, h - a.shape[2])))

    def pad2(a, r, c):
        return jnp.pad(a, ((0, r - a.shape[0]), (0, c - a.shape[1])))

    gin = jnp.concatenate(
        [pad3(gin_r, Sp, Bp, Hp),
         pad3(gin_z, Sp, Bp, Hp),
         pad3(gin_n, Sp, Bp, Hp)], axis=-1).astype(bf16)            # [Sp, Bp, 3Hp]
    mask_ld = jnp.broadcast_to(
        pad3(mask[..., None].astype(f32), Sp, Bp, 1), (Sp, Bp, 128))  # lane-dense
    hx0 = pad2(hx, Bp, Hp)                                          # [Bp, Hp]
    whh3 = jnp.concatenate(
        [pad2(whr, Hp, Hp), pad2(whz, Hp, Hp), pad2(whn, Hp, Hp)],
        axis=-1).astype(bf16)                                       # [Hp, 3Hp]
    bhn_p = pad2(bhn, 1, Hp).astype(f32)                            # [1, Hp]

    hseq, hx_out = pl.pallas_call(
        modgru_kernel,
        grid=(batch_split, n_chunks),
        in_specs=[
            pl.BlockSpec((T, Bb, 128), lambda b, c: (c, b, 0)),       # mask
            pl.BlockSpec((T, Bb, 3 * Hp), lambda b, c: (c, b, 0)),    # gates_in
            pl.BlockSpec((Bb, Hp), lambda b, c: (b, 0)),              # hx0 block
            pl.BlockSpec((Hp, 3 * Hp), lambda b, c: (0, 0)),          # fused W_hh
            pl.BlockSpec((1, Hp), lambda b, c: (0, 0)),               # b_hn
        ],
        out_specs=[
            pl.BlockSpec((T, Bb, Hp), lambda b, c: (c, b, 0)),        # hidden seq
            pl.BlockSpec((Bb, Hp), lambda b, c: (b, 0)),              # final hx
        ],
        out_shape=[
            jax.ShapeDtypeStruct((Sp, Bp, Hp), bf16),
            jax.ShapeDtypeStruct((Bp, Hp), f32),
        ],
        scratch_shapes=[pltpu.VMEM((Bb, Hp), f32)],
        compiler_params=pltpu.CompilerParams(
            dimension_semantics=("parallel", "arbitrary"),
            vmem_limit_bytes=_vmem_limit_bytes(T, Bb, Hp)),
    )(mask_ld, gin, hx0, whh3, bhn_p)

    # ---- Hoisted output projection: one big MXU matmul outside the loop ------
    out = out_pre + jnp.einsum('sbh,hk->sbk', hseq[:S, :B, :H],
                               woh.astype(bf16),
                               preferred_element_type=f32)
    return out, hx_out[:B, :H]


def modgru_ref(X, hx, mask, params):
    """Pure-JAX reference mirroring the PyTorch forward exactly (M=None)."""
    (wcx, wcm, bc, wir, wiz, win, whr, whz, whn,
     br, bz, bin_, bhn, woc, woh, bo) = params
    M = jnp.ones_like(X)
    outs = []
    for i in range(X.shape[0]):
        comb = X[i] @ wcx + M[i] @ wcm + bc
        r = jax.nn.sigmoid(comb @ wir + hx @ whr + br)
        z = jax.nn.sigmoid(comb @ wiz + hx @ whz + bz)
        n = jnp.tanh(comb @ win + bin_ + r * (hx @ whn + bhn))
        hx_cell = (1.0 - z) * n + z * hx
        mi = mask[i][:, None]
        hx = hx_cell * mi + hx * (1.0 - mi)
        out = comb @ woc + hx @ woh + bo
        outs.append(out)
    return jnp.stack(outs), hx


def init_params(key, input_dim, h_dim):
    """Deterministic init. Shapes follow nn.GRUCell / nn.Linear; matrices are
    stored pre-transposed ([in, out]); GRU gate weights split into r/z/n;
    b_ir+b_hr and b_iz+b_hz are pre-summed (valid per GRUCell equations)."""
    D, H = input_dim, h_dim
    ks = jax.random.split(key, 16)
    u = lambda k, shape, bound: jax.random.uniform(k, shape, jnp.float32, -bound, bound)
    kc = 1.0 / jnp.sqrt(2.0 * D)       # nn.Linear(2D, D)
    kh = 1.0 / jnp.sqrt(float(H))      # nn.GRUCell(D, H)
    k2 = 1.0 / jnp.sqrt(float(D + H))  # nn.Linear(D+H, H)
    wcx = u(ks[0], (D, D), kc)
    wcm = u(ks[1], (D, D), kc)
    bc = u(ks[2], (1, D), kc)
    wir = u(ks[3], (D, H), kh)
    wiz = u(ks[4], (D, H), kh)
    win = u(ks[5], (D, H), kh)
    whr = u(ks[6], (H, H), kh)
    whz = u(ks[7], (H, H), kh)
    whn = u(ks[8], (H, H), kh)
    br = u(ks[9], (1, H), kh) + u(ks[10], (1, H), kh)    # b_ir + b_hr
    bz = u(ks[11], (1, H), kh) + u(ks[12], (1, H), kh)   # b_iz + b_hz
    bin_ = u(ks[13], (1, H), kh)
    bhn = u(ks[14], (1, H), kh)
    k3 = jax.random.split(ks[15], 3)
    woc = u(k3[0], (D, H), k2)
    woh = u(k3[1], (H, H), k2)
    bo = u(k3[2], (1, H), k2)
    return (wcx, wcm, bc, wir, wiz, win, whr, whz, whn,
            br, bz, bin_, bhn, woc, woh, bo)


if __name__ == "__main__":
    # Small, deliberately "awkward" shapes: 3 time chunks (2 padded steps),
    # batch 20 -> padded 32 split across 2 blocks (exercises the "parallel"
    # batch axis), lane padding H=32 -> 128.
    S, B, D, H = 10, 20, 16, 32
    key = jax.random.PRNGKey(0)
    kx, kh_, km, kp = jax.random.split(key, 4)

    X = jax.random.normal(kx, (S, B, D), jnp.float32)
    hx = jax.random.normal(kh_, (B, H), jnp.float32)
    mask = jax.random.bernoulli(km, 0.7, (S, B)).astype(jnp.float32)
    params = init_params(kp, D, H)

    out, hx_final = modgru_forward(X, hx, mask, params, chunk=4, batch_split=2)
    out = jax.block_until_ready(out)
    hx_final = jax.block_until_ready(hx_final)

    out_ref, hx_ref = modgru_ref(X, hx, mask, params)
    assert out.shape == (S, B, H) and hx_final.shape == (B, H)
    # Streams/weights are bf16 (f32 carry & accumulation), so allow bf16-level
    # tolerance; typical max-abs error is ~1e-2 here.
    assert jnp.max(jnp.abs(out - out_ref)) < 5e-2, float(jnp.max(jnp.abs(out - out_ref)))
    assert jnp.max(jnp.abs(hx_final - hx_ref)) < 5e-2, float(jnp.max(jnp.abs(hx_final - hx_ref)))

    print("KERNEL_OK")
</pallas_src>

<mosaic_0001>
module attributes {stable_mosaic.version = 11 : i64} {
  func.func @modgru_kernel(%arg0: i32, %arg1: i32, %arg2: memref<4x16x128xf32, #tpu.memory_space<vmem>>, %arg3: memref<4x16x384xbf16, #tpu.memory_space<vmem>>, %arg4: memref<16x128xf32, #tpu.memory_space<vmem>>, %arg5: memref<128x384xbf16, #tpu.memory_space<vmem>>, %arg6: memref<1x128xf32, #tpu.memory_space<vmem>>, %arg7: memref<4x16x128xbf16, #tpu.memory_space<vmem>>, %arg8: memref<16x128xf32, #tpu.memory_space<vmem>>, %arg9: memref<16x128xf32, #tpu.memory_space<vmem>>) attributes {dimension_semantics = [#tpu.dimension_semantics<parallel>, #tpu.dimension_semantics<arbitrary>], iteration_bounds = array<i64: 2, 3>, scalar_prefetch = 0 : i64, scratch_operands = 1 : i64, tpu.core_type = #tpu.core_type<tc>, window_params = [{transform_indices = @transform_0, window_bounds = array<i64: 4, 16, 128>}, {transform_indices = @transform_1, window_bounds = array<i64: 4, 16, 384>}, {transform_indices = @transform_2, window_bounds = array<i64: 16, 128>}, {pipeline_mode = #tpu.pipeline_mode<synchronous>, transform_indices = @transform_3, window_bounds = array<i64: 128, 384>}, {pipeline_mode = #tpu.pipeline_mode<synchronous>, transform_indices = @transform_4, window_bounds = array<i64: 1, 128>}, {transform_indices = @transform_5, window_bounds = array<i64: 4, 16, 128>}, {transform_indices = @transform_6, window_bounds = array<i64: 16, 128>}]} {
    %c0_i32 = arith.constant 0 : i32
    %0 = arith.cmpi eq, %arg1, %c0_i32 : i32
    %1 = arith.extui %0 : i1 to i32
    %c0_i32_0 = arith.constant 0 : i32
    %2 = arith.cmpi ne, %1, %c0_i32_0 : i32
    scf.if %2 {
      %c0_46 = arith.constant 0 : index
      %c0_47 = arith.constant 0 : index
      %174 = vector.load %arg4[%c0_46, %c0_47] : memref<16x128xf32, #tpu.memory_space<vmem>>, vector<16x128xf32>
      %c0_48 = arith.constant 0 : index
      %c0_49 = arith.constant 0 : index
      %175 = vector.load %arg9[%c0_48, %c0_49] : memref<16x128xf32, #tpu.memory_space<vmem>>, vector<16x128xf32>
      tpu.vector_store %arg9[%c0_48, %c0_49], %174 {strides = array<i32>} : memref<16x128xf32, #tpu.memory_space<vmem>>, vector<16x128xf32>,
    } else {
    }
    %c0 = arith.constant 0 : index
    %c0_1 = arith.constant 0 : index
    %3 = vector.load %arg5[%c0, %c0_1] : memref<128x384xbf16, #tpu.memory_space<vmem>>, vector<128x384xbf16>
    %c0_2 = arith.constant 0 : index
    %c0_3 = arith.constant 0 : index
    %4 = vector.load %arg6[%c0_2, %c0_3] : memref<1x128xf32, #tpu.memory_space<vmem>>, vector<1x128xf32>
    %c0_4 = arith.constant 0 : index
    %c0_5 = arith.constant 0 : index
    %5 = vector.load %arg9[%c0_4, %c0_5] : memref<16x128xf32, #tpu.memory_space<vmem>>, vector<16x128xf32>
    %c0_i32_6 = arith.constant 0 : i32
    %6 = arith.index_cast %c0_i32_6 : i32 to index
    %c0_7 = arith.constant 0 : index
    %c0_8 = arith.constant 0 : index
    %7 = vector.load %arg3[%6, %c0_7, %c0_8] : memref<4x16x384xbf16, #tpu.memory_space<vmem>>, vector<1x16x384xbf16>
    %8 = vector.shape_cast %7 : vector<1x16x384xbf16> to vector<16x384xbf16>
    %9 = arith.extf %8 : vector<16x384xbf16> to vector<16x384xf32>
    %10 = arith.index_cast %c0_i32_6 : i32 to index
    %c0_9 = arith.constant 0 : index
    %c0_10 = arith.constant 0 : index
    %11 = vector.load %arg2[%10, %c0_9, %c0_10] : memref<4x16x128xf32, #tpu.memory_space<vmem>>, vector<1x16x128xf32>
    %12 = vector.shape_cast %11 : vector<1x16x128xf32> to vector<16x128xf32>
    %13 = vector.extract_strided_slice %12 {offsets = [0, 0], sizes = [16, 1], strides = [1, 1]} : vector<16x128xf32> to vector<16x1xf32>
    %14 = arith.truncf %5 : vector<16x128xf32> to vector<16x128xbf16>
    %cst = arith.constant dense<0.000000e+00> : vector<16x384xf32>
    %15 = tpu.matmul %14, %3, %cst {dimension_numbers = #tpu.dot_dimension_numbers<[1], [0], [0], [1], [0, 0, 1, 1], [], []>} : vector<16x128xbf16>, vector<128x384xbf16>, vector<16x384xf32> -> vector<16x384xf32>
    %16 = vector.extract_strided_slice %9 {offsets = [0, 0], sizes = [16, 256], strides = [1, 1]} : vector<16x384xf32> to vector<16x256xf32>
    %17 = vector.extract_strided_slice %15 {offsets = [0, 0], sizes = [16, 256], strides = [1, 1]} : vector<16x384xf32> to vector<16x256xf32>
    %18 = arith.addf %16, %17 : vector<16x256xf32>
    %19 = arith.negf %18 : vector<16x256xf32>
    %20 = math.exp %19 : vector<16x256xf32>
    %cst_11 = arith.constant 1.000000e+00 : f32
    %21 = vector.broadcast %cst_11 : f32 to vector<16x256xf32>
    %22 = arith.addf %21, %20 : vector<16x256xf32>
    %23 = arith.divf %21, %22 : vector<16x256xf32>
    %24 = vector.extract_strided_slice %23 {offsets = [0, 0], sizes = [16, 128], strides = [1, 1]} : vector<16x256xf32> to vector<16x128xf32>
    %25 = vector.extract_strided_slice %23 {offsets = [0, 128], sizes = [16, 128], strides = [1, 1]} : vector<16x256xf32> to vector<16x128xf32>
    %26 = vector.extract_strided_slice %9 {offsets = [0, 256], sizes = [16, 128], strides = [1, 1]} : vector<16x384xf32> to vector<16x128xf32>
    %27 = vector.extract_strided_slice %15 {offsets = [0, 256], sizes = [16, 128], strides = [1, 1]} : vector<16x384xf32> to vector<16x128xf32>
    %28 = vector.broadcast %4 : vector<1x128xf32> to vector<16x128xf32>
    %29 = arith.addf %27, %28 : vector<16x128xf32>
    %30 = arith.mulf %24, %29 : vector<16x128xf32>
    %31 = arith.addf %26, %30 : vector<16x128xf32>
    %32 = math.tanh %31 : vector<16x128xf32>
    %cst_12 = arith.constant 1.000000e+00 : f32
    %33 = vector.broadcast %cst_12 : f32 to vector<16x128xf32>
    %34 = arith.subf %33, %25 : vector<16x128xf32>
    %35 = arith.mulf %34, %32 : vector<16x128xf32>
    %36 = arith.mulf %25, %5 : vector<16x128xf32>
    %37 = arith.addf %35, %36 : vector<16x128xf32>
    %38 = arith.subf %37, %5 : vector<16x128xf32>
    %39 = vector.broadcast %13 : vector<16x1xf32> to vector<16x128xf32>
    %40 = arith.mulf %39, %38 : vector<16x128xf32>
    %41 = arith.addf %5, %40 : vector<16x128xf32>
    %42 = arith.truncf %41 : vector<16x128xf32> to vector<16x128xbf16>
    %43 = arith.index_cast %c0_i32_6 : i32 to index
    %c0_13 = arith.constant 0 : index
    %c0_14 = arith.constant 0 : index
    %44 = vector.load %arg7[%43, %c0_13, %c0_14] : memref<4x16x128xbf16, #tpu.memory_space<vmem>>, vector<1x16x128xbf16>
    %45 = vector.shape_cast %44 : vector<1x16x128xbf16> to vector<16x128xbf16>
    %46 = vector.shape_cast %42 : vector<16x128xbf16> to vector<1x16x128xbf16>
    tpu.vector_store %arg7[%43, %c0_13, %c0_14], %46 {strides = array<i32>} : memref<4x16x128xbf16, #tpu.memory_space<vmem>>, vector<1x16x128xbf16>,
    %c1_i32 = arith.constant 1 : i32
    %47 = arith.index_cast %c1_i32 : i32 to index
    %c0_15 = arith.constant 0 : index
    %c0_16 = arith.constant 0 : index
    %48 = vector.load %arg3[%47, %c0_15, %c0_16] : memref<4x16x384xbf16, #tpu.memory_space<vmem>>, vector<1x16x384xbf16>
    %49 = vector.shape_cast %48 : vector<1x16x384xbf16> to vector<16x384xbf16>
    %50 = arith.extf %49 : vector<16x384xbf16> to vector<16x384xf32>
    %51 = arith.index_cast %c1_i32 : i32 to index
    %c0_17 = arith.constant 0 : index
    %c0_18 = arith.constant 0 : index
    %52 = vector.load %arg2[%51, %c0_17, %c0_18] : memref<4x16x128xf32, #tpu.memory_space<vmem>>, vector<1x16x128xf32>
    %53 = vector.shape_cast %52 : vector<1x16x128xf32> to vector<16x128xf32>
    %54 = vector.extract_strided_slice %53 {offsets = [0, 0], sizes = [16, 1], strides = [1, 1]} : vector<16x128xf32> to vector<16x1xf32>
    %55 = arith.truncf %41 : vector<16x128xf32> to vector<16x128xbf16>
    %cst_19 = arith.constant dense<0.000000e+00> : vector<16x384xf32>
    %56 = tpu.matmul %55, %3, %cst_19 {dimension_numbers = #tpu.dot_dimension_numbers<[1], [0], [0], [1], [0, 0, 1, 1], [], []>} : vector<16x128xbf16>, vector<128x384xbf16>, vector<16x384xf32> -> vector<16x384xf32>
    %57 = vector.extract_strided_slice %50 {offsets = [0, 0], sizes = [16, 256], strides = [1, 1]} : vector<16x384xf32> to vector<16x256xf32>
    %58 = vector.extract_strided_slice %56 {offsets = [0, 0], sizes = [16, 256], strides = [1, 1]} : vector<16x384xf32> to vector<16x256xf32>
    %59 = arith.addf %57, %58 : vector<16x256xf32>
    %60 = arith.negf %59 : vector<16x256xf32>
    %61 = math.exp %60 : vector<16x256xf32>
    %cst_20 = arith.constant 1.000000e+00 : f32
    %62 = vector.broadcast %cst_20 : f32 to vector<16x256xf32>
    %63 = arith.addf %62, %61 : vector<16x256xf32>
    %64 = arith.divf %62, %63 : vector<16x256xf32>
    %65 = vector.extract_strided_slice %64 {offsets = [0, 0], sizes = [16, 128], strides = [1, 1]} : vector<16x256xf32> to vector<16x128xf32>
    %66 = vector.extract_strided_slice %64 {offsets = [0, 128], sizes = [16, 128], strides = [1, 1]} : vector<16x256xf32> to vector<16x128xf32>
    %67 = vector.extract_strided_slice %50 {offsets = [0, 256], sizes = [16, 128], strides = [1, 1]} : vector<16x384xf32> to vector<16x128xf32>
    %68 = vector.extract_strided_slice %56 {offsets = [0, 256], sizes = [16, 128], strides = [1, 1]} : vector<16x384xf32> to vector<16x128xf32>
    %69 = vector.broadcast %4 : vector<1x128xf32> to vector<16x128xf32>
    %70 = arith.addf %68, %69 : vector<16x128xf32>
    %71 = arith.mulf %65, %70 : vector<16x128xf32>
    %72 = arith.addf %67, %71 : vector<16x128xf32>
    %73 = math.tanh %72 : vector<16x128xf32>
    %cst_21 = arith.constant 1.000000e+00 : f32
    %74 = vector.broadcast %cst_21 : f32 to vector<16x128xf32>
    %75 = arith.subf %74, %66 : vector<16x128xf32>
    %76 = arith.mulf %75, %73 : vector<16x128xf32>
    %77 = arith.mulf %66, %41 : vector<16x128xf32>
    %78 = arith.addf %76, %77 : vector<16x128xf32>
    %79 = arith.subf %78, %41 : vector<16x128xf32>
    %80 = vector.broadcast %54 : vector<16x1xf32> to vector<16x128xf32>
    %81 = arith.mulf %80, %79 : vector<16x128xf32>
    %82 = arith.addf %41, %81 : vector<16x128xf32>
    %83 = arith.truncf %82 : vector<16x128xf32> to vector<16x128xbf16>
    %84 = arith.index_cast %c1_i32 : i32 to index
    %c0_22 = arith.constant 0 : index
    %c0_23 = arith.constant 0 : index
    %85 = vector.load %arg7[%84, %c0_22, %c0_23] : memref<4x16x128xbf16, #tpu.memory_space<vmem>>, vector<1x16x128xbf16>
    %86 = vector.shape_cast %85 : vector<1x16x128xbf16> to vector<16x128xbf16>
    %87 = vector.shape_cast %83 : vector<16x128xbf16> to vector<1x16x128xbf16>
    tpu.vector_store %arg7[%84, %c0_22, %c0_23], %87 {strides = array<i32>} : memref<4x16x128xbf16, #tpu.memory_space<vmem>>, vector<1x16x128xbf16>,
    %c2_i32 = arith.constant 2 : i32
    %88 = arith.index_cast %c2_i32 : i32 to index
    %c0_24 = arith.constant 0 : index
    %c0_25 = arith.constant 0 : index
    %89 = vector.load %arg3[%88, %c0_24, %c0_25] : memref<4x16x384xbf16, #tpu.memory_space<vmem>>, vector<1x16x384xbf16>
    %90 = vector.shape_cast %89 : vector<1x16x384xbf16> to vector<16x384xbf16>
    %91 = arith.extf %90 : vector<16x384xbf16> to vector<16x384xf32>
    %92 = arith.index_cast %c2_i32 : i32 to index
    %c0_26 = arith.constant 0 : index
    %c0_27 = arith.constant 0 : index
    %93 = vector.load %arg2[%92, %c0_26, %c0_27] : memref<4x16x128xf32, #tpu.memory_space<vmem>>, vector<1x16x128xf32>
    %94 = vector.shape_cast %93 : vector<1x16x128xf32> to vector<16x128xf32>
    %95 = vector.extract_strided_slice %94 {offsets = [0, 0], sizes = [16, 1], strides = [1, 1]} : vector<16x128xf32> to vector<16x1xf32>
    %96 = arith.truncf %82 : vector<16x128xf32> to vector<16x128xbf16>
    %cst_28 = arith.constant dense<0.000000e+00> : vector<16x384xf32>
    %97 = tpu.matmul %96, %3, %cst_28 {dimension_numbers = #tpu.dot_dimension_numbers<[1], [0], [0], [1], [0, 0, 1, 1], [], []>} : vector<16x128xbf16>, vector<128x384xbf16>, vector<16x384xf32> -> vector<16x384xf32>
    %98 = vector.extract_strided_slice %91 {offsets = [0, 0], sizes = [16, 256], strides = [1, 1]} : vector<16x384xf32> to vector<16x256xf32>
    %99 = vector.extract_strided_slice %97 {offsets = [0, 0], sizes = [16, 256], strides = [1, 1]} : vector<16x384xf32> to vector<16x256xf32>
    %100 = arith.addf %98, %99 : vector<16x256xf32>
    %101 = arith.negf %100 : vector<16x256xf32>
    %102 = math.exp %101 : vector<16x256xf32>
    %cst_29 = arith.constant 1.000000e+00 : f32
    %103 = vector.broadcast %cst_29 : f32 to vector<16x256xf32>
    %104 = arith.addf %103, %102 : vector<16x256xf32>
    %105 = arith.divf %103, %104 : vector<16x256xf32>
    %106 = vector.extract_strided_slice %105 {offsets = [0, 0], sizes = [16, 128], strides = [1, 1]} : vector<16x256xf32> to vector<16x128xf32>
    %107 = vector.extract_strided_slice %105 {offsets = [0, 128], sizes = [16, 128], strides = [1, 1]} : vector<16x256xf32> to vector<16x128xf32>
    %108 = vector.extract_strided_slice %91 {offsets = [0, 256], sizes = [16, 128], strides = [1, 1]} : vector<16x384xf32> to vector<16x128xf32>
    %109 = vector.extract_strided_slice %97 {offsets = [0, 256], sizes = [16, 128], strides = [1, 1]} : vector<16x384xf32> to vector<16x128xf32>
    %110 = vector.broadcast %4 : vector<1x128xf32> to vector<16x128xf32>
    %111 = arith.addf %109, %110 : vector<16x128xf32>
    %112 = arith.mulf %106, %111 : vector<16x128xf32>
    %113 = arith.addf %108, %112 : vector<16x128xf32>
    %114 = math.tanh %113 : vector<16x128xf32>
    %cst_30 = arith.constant 1.000000e+00 : f32
    %115 = vector.broadcast %cst_30 : f32 to vector<16x128xf32>
    %116 = arith.subf %115, %107 : vector<16x128xf32>
    %117 = arith.mulf %116, %114 : vector<16x128xf32>
    %118 = arith.mulf %107, %82 : vector<16x128xf32>
    %119 = arith.addf %117, %118 : vector<16x128xf32>
    %120 = arith.subf %119, %82 : vector<16x128xf32>
    %121 = vector.broadcast %95 : vector<16x1xf32> to vector<16x128xf32>
    %122 = arith.mulf %121, %120 : vector<16x128xf32>
    %123 = arith.addf %82, %122 : vector<16x128xf32>
    %124 = arith.truncf %123 : vector<16x128xf32> to vector<16x128xbf16>
    %125 = arith.index_cast %c2_i32 : i32 to index
    %c0_31 = arith.constant 0 : index
    %c0_32 = arith.constant 0 : index
    %126 = vector.load %arg7[%125, %c0_31, %c0_32] : memref<4x16x128xbf16, #tpu.memory_space<vmem>>, vector<1x16x128xbf16>
    %127 = vector.shape_cast %126 : vector<1x16x128xbf16> to vector<16x128xbf16>
    %128 = vector.shape_cast %124 : vector<16x128xbf16> to vector<1x16x128xbf16>
    tpu.vector_store %arg7[%125, %c0_31, %c0_32], %128 {strides = array<i32>} : memref<4x16x128xbf16, #tpu.memory_space<vmem>>, vector<1x16x128xbf16>,
    %c3_i32 = arith.constant 3 : i32
    %129 = arith.index_cast %c3_i32 : i32 to index
    %c0_33 = arith.constant 0 : index
    %c0_34 = arith.constant 0 : index
    %130 = vector.load %arg3[%129, %c0_33, %c0_34] : memref<4x16x384xbf16, #tpu.memory_space<vmem>>, vector<1x16x384xbf16>
    %131 = vector.shape_cast %130 : vector<1x16x384xbf16> to vector<16x384xbf16>
    %132 = arith.extf %131 : vector<16x384xbf16> to vector<16x384xf32>
    %133 = arith.index_cast %c3_i32 : i32 to index
    %c0_35 = arith.constant 0 : index
    %c0_36 = arith.constant 0 : index
    %134 = vector.load %arg2[%133, %c0_35, %c0_36] : memref<4x16x128xf32, #tpu.memory_space<vmem>>, vector<1x16x128xf32>
    %135 = vector.shape_cast %134 : vector<1x16x128xf32> to vector<16x128xf32>
    %136 = vector.extract_strided_slice %135 {offsets = [0, 0], sizes = [16, 1], strides = [1, 1]} : vector<16x128xf32> to vector<16x1xf32>
    %137 = arith.truncf %123 : vector<16x128xf32> to vector<16x128xbf16>
    %cst_37 = arith.constant dense<0.000000e+00> : vector<16x384xf32>
    %138 = tpu.matmul %137, %3, %cst_37 {dimension_numbers = #tpu.dot_dimension_numbers<[1], [0], [0], [1], [0, 0, 1, 1], [], []>} : vector<16x128xbf16>, vector<128x384xbf16>, vector<16x384xf32> -> vector<16x384xf32>
    %139 = vector.extract_strided_slice %132 {offsets = [0, 0], sizes = [16, 256], strides = [1, 1]} : vector<16x384xf32> to vector<16x256xf32>
    %140 = vector.extract_strided_slice %138 {offsets = [0, 0], sizes = [16, 256], strides = [1, 1]} : vector<16x384xf32> to vector<16x256xf32>
    %141 = arith.addf %139, %140 : vector<16x256xf32>
    %142 = arith.negf %141 : vector<16x256xf32>
    %143 = math.exp %142 : vector<16x256xf32>
    %cst_38 = arith.constant 1.000000e+00 : f32
    %144 = vector.broadcast %cst_38 : f32 to vector<16x256xf32>
    %145 = arith.addf %144, %143 : vector<16x256xf32>
    %146 = arith.divf %144, %145 : vector<16x256xf32>
    %147 = vector.extract_strided_slice %146 {offsets = [0, 0], sizes = [16, 128], strides = [1, 1]} : vector<16x256xf32> to vector<16x128xf32>
    %148 = vector.extract_strided_slice %146 {offsets = [0, 128], sizes = [16, 128], strides = [1, 1]} : vector<16x256xf32> to vector<16x128xf32>
    %149 = vector.extract_strided_slice %132 {offsets = [0, 256], sizes = [16, 128], strides = [1, 1]} : vector<16x384xf32> to vector<16x128xf32>
    %150 = vector.extract_strided_slice %138 {offsets = [0, 256], sizes = [16, 128], strides = [1, 1]} : vector<16x384xf32> to vector<16x128xf32>
    %151 = vector.broadcast %4 : vector<1x128xf32> to vector<16x128xf32>
    %152 = arith.addf %150, %151 : vector<16x128xf32>
    %153 = arith.mulf %147, %152 : vector<16x128xf32>
    %154 = arith.addf %149, %153 : vector<16x128xf32>
    %155 = math.tanh %154 : vector<16x128xf32>
    %cst_39 = arith.constant 1.000000e+00 : f32
    %156 = vector.broadcast %cst_39 : f32 to vector<16x128xf32>
    %157 = arith.subf %156, %148 : vector<16x128xf32>
    %158 = arith.mulf %157, %155 : vector<16x128xf32>
    %159 = arith.mulf %148, %123 : vector<16x128xf32>
    %160 = arith.addf %158, %159 : vector<16x128xf32>
    %161 = arith.subf %160, %123 : vector<16x128xf32>
    %162 = vector.broadcast %136 : vector<16x1xf32> to vector<16x128xf32>
    %163 = arith.mulf %162, %161 : vector<16x128xf32>
    %164 = arith.addf %123, %163 : vector<16x128xf32>
    %165 = arith.truncf %164 : vector<16x128xf32> to vector<16x128xbf16>
    %166 = arith.index_cast %c3_i32 : i32 to index
    %c0_40 = arith.constant 0 : index
    %c0_41 = arith.constant 0 : index
    %167 = vector.load %arg7[%166, %c0_40, %c0_41] : memref<4x16x128xbf16, #tpu.memory_space<vmem>>, vector<1x16x128xbf16>
    %168 = vector.shape_cast %167 : vector<1x16x128xbf16> to vector<16x128xbf16>
    %169 = vector.shape_cast %165 : vector<16x128xbf16> to vector<1x16x128xbf16>
    tpu.vector_store %arg7[%166, %c0_40, %c0_41], %169 {strides = array<i32>} : memref<4x16x128xbf16, #tpu.memory_space<vmem>>, vector<1x16x128xbf16>,
    %c4_i32 = arith.constant 4 : i32
    %c0_42 = arith.constant 0 : index
    %c0_43 = arith.constant 0 : index
    %170 = vector.load %arg9[%c0_42, %c0_43] : memref<16x128xf32, #tpu.memory_space<vmem>>, vector<16x128xf32>
    tpu.vector_store %arg9[%c0_42, %c0_43], %164 {strides = array<i32>} : memref<16x128xf32, #tpu.memory_space<vmem>>, vector<16x128xf32>,
    %c2_i32_44 = arith.constant 2 : i32
    %171 = arith.cmpi eq, %arg1, %c2_i32_44 : i32
    %172 = arith.extui %171 : i1 to i32
    %c0_i32_45 = arith.constant 0 : i32
    %173 = arith.cmpi ne, %172, %c0_i32_45 : i32
    scf.if %173 {
      %c0_46 = arith.constant 0 : index
      %c0_47 = arith.constant 0 : index
      %174 = vector.load %arg8[%c0_46, %c0_47] : memref<16x128xf32, #tpu.memory_space<vmem>>, vector<16x128xf32>
      tpu.vector_store %arg8[%c0_46, %c0_47], %164 {strides = array<i32>} : memref<16x128xf32, #tpu.memory_space<vmem>>, vector<16x128xf32>,
    } else {
    }
    return
  }
  func.func @transform_0(%arg0: i32, %arg1: i32) -> (i32, i32, i32) {
    %c0_i32 = arith.constant 0 : i32
    %c0_i32_0 = arith.constant 0 : i32
    return %arg1, %arg0, %c0_i32 : i32, i32, i32
  }
  func.func @transform_1(%arg0: i32, %arg1: i32) -> (i32, i32, i32) {
    %c0_i32 = arith.constant 0 : i32
    %c0_i32_0 = arith.constant 0 : i32
    return %arg1, %arg0, %c0_i32 : i32, i32, i32
  }
  func.func @transform_2(%arg0: i32, %arg1: i32) -> (i32, i32) {
    %c0_i32 = arith.constant 0 : i32
    %c0_i32_0 = arith.constant 0 : i32
    return %arg0, %c0_i32 : i32, i32
  }
  func.func @transform_3(%arg0: i32, %arg1: i32) -> (i32, i32) {
    %c0_i32 = arith.constant 0 : i32
    %c0_i32_0 = arith.constant 0 : i32
    %c0_i32_1 = arith.constant 0 : i32
    return %c0_i32, %c0_i32_0 : i32, i32
  }
  func.func @transform_4(%arg0: i32, %arg1: i32) -> (i32, i32) {
    %c0_i32 = arith.constant 0 : i32
    %c0_i32_0 = arith.constant 0 : i32
    %c0_i32_1 = arith.constant 0 : i32
    return %c0_i32, %c0_i32_0 : i32, i32
  }
  func.func @transform_5(%arg0: i32, %arg1: i32) -> (i32, i32, i32) {
    %c0_i32 = arith.constant 0 : i32
    %c0_i32_0 = arith.constant 0 : i32
    return %arg1, %arg0, %c0_i32 : i32, i32, i32
  }
  func.func @transform_6(%arg0: i32, %arg1: i32) -> (i32, i32) {
    %c0_i32 = arith.constant 0 : i32
    %c0_i32_0 = arith.constant 0 : i32
    return %arg0, %c0_i32 : i32, i32
  }
}

</mosaic_0001>

<bundles_post_ra>
// kernel: tpu_custom_call.1
= control target key start
LH: loop header
LB: loop body
LE: loop exit
PB: predicated region body
PF: predicated region fallthrough
CT: control target
= control target key end

     0   :  { %s3006_s0 = inlined_call_operand.hbm [shape: f32[12,32,128], index: 0, kind: input, shape index: {}]   ;;  %s3007_s1 = inlined_call_operand.hbm [shape: bf16[12,32,384], index: 1, kind: input, shape index: {}]   ;;  %s3008_s2 = inlined_call_operand.hbm [shape: f32[32,128], index: 2, kind: input, shape index: {}]   ;;  %s3009_s3 = inlined_call_operand.hbm [shape: bf16[128,384], index: 3, kind: input, shape index: {}]   ;;  %s3010_s4 = inlined_call_operand.vmem [shape: f32[1,128], index: 4, kind: input, shape index: {}]   ;;  %s3011_s5 = inlined_call_operand.hbm [shape: bf16[12,32,128], index: 5, kind: output, shape index: {0}]   ;;  %s3012_s6 = inlined_call_operand.hbm [shape: f32[32,128], index: 6, kind: output, shape index: {1}]  }
   0x1   :  { %3031 = sst [smem:[#allocation41_spill]] %s3006_s0 }
   0x2   :  { %3032 = sst [smem:[#allocation42_spill]] %s3009_s3 }
   0x3   :  { %3033 = sst [smem:[#allocation43_spill]] %s3011_s5 }
   0x4   :  { %3034 = sst [smem:[#allocation44_spill]] %s3012_s6 }
   0x5   :  { %12 = vsyncpa [#allocation4], 0 }
   0x6   :  { %14 = vsyncpa [#allocation4 + $0x1], 0 }
   0x7   :  { %15 = vsyncpa [#allocation7], 0 }
   0x8   :  { %17 = vsyncpa [#allocation7 + $0x1], 0 }
   0x9   :  { %18 = vsyncpa [#allocation10], 0 }
   0xa   :  { %19 = vsyncpa [#allocation5], 0 }
   0xb   :  { %21 = vsyncpa [#allocation5 + $0x1], 0 }
   0xc   :  { %22 = vsyncpa [#allocation13], 0 }
   0xd   :  { %24 = vsyncpa [#allocation13 + $0x1], 0  ;;  %s2335_s21 = smov 0   ;;  %s2337_s22 = smov 0  }
   0xe   :  { %s2339_s23 = smov 0   ;;  %s2341_s24 = smov 0  }
   0xf   :  { %s2343_s25 = smov 0   ;;  %s2345_s26 = smov 0  }
  0x10   :  { %s2347_s27 = smov 0   ;;  %s2349_s28 = smov 0  }
  0x11   :  { %s2351_s29 = smov 0   ;;  %s2353_s30 = smov 0  }
  0x12   :  { %s2355_s7 = smov 0  }
  0x13 LB: > { %3035 = sst [smem:[#allocation28_spill]] %s2231_s21  ;;  %s2391_s8 = sadd.s32 4294967295, %s2271_s7   ;;  %s2271_s7 = sphi %s2355_s7, %s30_s7   ;;  %s2267_s30 = sphi %s2353_s30, %s3092_s30   ;;  %s2263_s29 = sphi %s2351_s29, %s3084_s29   ;;  %s2259_s28 = sphi %s2349_s28, %s3091_s28   ;;  %s2255_s27 = sphi %s2347_s27, %s3083_s27   ;;  %s2251_s26 = sphi %s2345_s26, %s3082_s26   ;;  %s2247_s25 = sphi %s2343_s25, %s3090_s25   ;;  %s2243_s24 = sphi %s2341_s24, %s3089_s24   ;;  %s2239_s23 = sphi %s2339_s23, %s3088_s23   ;;  %s2235_s22 = sphi %s2337_s22, %s3087_s22   ;;  %s2231_s21 = sphi %s2335_s21, %s3086_s21  }
  0x14   : > { %3036 = sst [smem:[#allocation29_spill]] %s2243_s24  ;;  %s1598_s9 = sadd.s32 4294967294, %s2271_s7  }
  0x15   : > { %3037 = sst [smem:[#allocation30_spill]] %s2251_s26  ;;  %s39_s10 = sadd.s32 1, %s2263_s29 }
  0x16   : > { %3038 = sst [smem:[#allocation31_spill]] %s2259_s28  ;;  %s42_s11 = sadd.s32 1, %s2267_s30 }
  0x17   : > { %3039 = sst [smem:[#allocation32_spill]] %s2263_s29  ;;  %p40_p0 = scmp.ge.s32.totalorder %s39_s10, 3 }
  0x18   : > { %s51_s12 = sadd.s32 1, %s2251_s26  ;;  %p58_p1 = scmp.ne.s32.totalorder %s2251_s26, %s2247_s25 }
  0x19   : > { %p59_p2 = scmp.eq.s32.totalorder %s2271_s7, 0  ;;  %s3094_s10 = smov (%p40_p0, %s39_s10), 0 }
  0x1a   : > { %3040 = sst [smem:[#allocation33_spill]] %s3094_s10  ;;  %s3096_s11 = smov (!%p40_p0, %s42_s11), %s2267_s30 }
  0x1b   : > { %s46_s13 = ssub.s32 %s2263_s29, %s3094_s10  ;;  %p2410_p3 = por %p59_p2, %p58_p1 }
  0x1c   : > { %p44_p4 = scmp.ge.s32.totalorder %s3096_s11, 2  ;;  %p3015_p5 = scmp.ne.s32.totalorder %s2247_s25, %s2243_s24 }
  0x1d   : > { %p3017_p6 = scmp.eq.s32.totalorder %s2391_s8, 0  ;;  %s105_s15 = sadd.s32 1, %s2239_s23 }
  0x1e   : > { %s3098_s11 = smov (%p44_p4, %s3096_s11), 0  ;;  %p112_p8 = scmp.ne.s32.totalorder %s2239_s23, %s2235_s22 }
  0x1f   : > { %3042 = sst [smem:[#allocation34_spill]] %s3098_s11  ;;  %p2425_p7 = por %p3017_p6, %p3015_p5 }
  0x20   : > { %s47_s17 = ssub.s32 %s2267_s30, %s3098_s11  ;;  %p118_p9 = scmp.ne.s32.totalorder %s2235_s22, %s2231_s21 }
  0x21   : > { %s3043_s16 = scalar_select %p2425_p7, 1, 0 }
  0x22   : > { %s48_s18 = sor.u32 %s47_s17, %s46_s13  ;;  %p103_p10 = scmp.eq.s32.totalorder %s47_s17, 0 }
  0x23   : > { %p49_p11 = scmp.eq.s32.totalorder %s48_s18, 0  ;;  %p2440_p12 = por %p112_p8, %p59_p2 }
  0x24   : > { %s2445_s20 = scalar_select %p103_p10, %s2239_s23, %s105_s15  }
  0x25   : > { %s2448_s10 = scalar_select %p49_p11, %s2251_s26, %s51_s12  }
  0x26   : > { %3045 = sst [smem:[#allocation35_spill]] %s2445_s20  ;;  %p2455_p13 = por %p118_p9, %p3017_p6 }
  0x27   : > { %3046 = sst [smem:[#allocation36_spill]] %s2448_s10  ;;  %p186_p0 = scmp.eq.s32.totalorder %s2391_s8, 5 }
  0x28   : > { %s3047_s6 = scalar_select %p2455_p13, 1, 0 }
  0x29   : > { %p192_p4 = scmp.eq.s32.totalorder %s1598_s9, 5  ;;  %p1599_p5 = scmp.ge.s32.totalorder %s2271_s7, 1 }
  0x2a   : > { %p2464_p7 = por %p186_p0, %p58_p1  ;;  %p2471_p2 = por %p186_p0, %p112_p8 }
  0x2b   : > { %p3052_p10 = scmp.ne.s32.totalorder %s2247_s25, %s2243_s24  ;;  %p2485_p6 = por %p192_p4, %p118_p9 }
  0x2c   : > { %s3048_s13 = scalar_select %p2464_p7, 1, 0 }
  0x2d   : > { %s3050_s15 = scalar_select %p2471_p2, 1, 0 }
  0x2e   : > { %3049 = sst [smem:[#allocation37_spill]] %s3048_s13  ;;  %p2478_p11 = por %p192_p4, %p3052_p10 }
  0x2f   : > { %3051 = sst [smem:[#allocation38_spill]] %s3050_s15  ;;  %p225_p13 = scmp.lt.s32.totalorder %s2271_s7, 7 }
  0x30   : > { %s3053_s12 = scalar_select %p2478_p11, 1, 0 }
  0x31   : > { %s3055_s17 = scalar_select %p2485_p6, 1, 0 }
  0x32   : > { %3054 = sst [smem:[#allocation39_spill]] %s3053_s12  ;;  %p2493_p1 = pnand %p1599_p5, %p225_p13 }
  0x33   : > { %3056 = sst [smem:[#allocation40_spill]] %s3055_s17  ;;  %s2273_s20 = smov [#allocation9]  }
  0x34   : > { %s3057_s3 = sld [smem:[#allocation42_spill]]  ;;  %s238_s24 = sshll.u32 %s2273_s20, 4  ;;  %s239_s24 = int_to_ptr.vmem [resolvable:$true] %s238_s24 }
  0x35   : > { %p1862_p8 = pneg %p2493_p1  ;;  %p3059_p9 = scmp.eq.s32.totalorder %s2391_s8, 0 }
  0x36   : > { %s2274_s21 = smov 192   ;;  %s2275_s17 = smov 12  }
  0x37   : > { %p1863_p0 = pnand %p1862_p8, %p3059_p9  ;;  %p1601_p4 = scmp.ge.s32.totalorder %s2271_s7, 6 }
  0x39   : > { %251 = sbr.rel (%p1601_p4) target bundleno = 99 (0x63), region = 24 }
  0x3a   : > { %s236_s11 = sshll.u32 %s3057_s3, 4  ;;  %s237_s11 = int_to_ptr.hbm [resolvable:$true] %s236_s11 }
  0x3b   : > { %1865 = dma.hbm_to_vmem [thread:$0]  (!%p1863_p0), %s237_s11, 3072, %s239_s24, [#allocation10], %s2274_s21, %s2274_s21, %s2275_s17  }
  0x3e   : > { %s2503_s9 = sand.u32 1, %s2251_s26   ;;  %s1604_s20 = sshll.u32 %s2267_s30, 1 }
  0x3f   : > { %s1602_s18 = sshll.u32 %s2503_s9, 6  ;;  %s1773_s3 = sshll.u32 %s2263_s29, 4 }
  0x40   : > { %s265_s12 = sadd.s32 %s1773_s3, %s1604_s20  ;;  %s259_s21 = scalar_lea.vmem [#allocation3], %s1602_s18 }
  0x41   : > { %s1606_s15 = sshll.u32 %s265_s12, 3  ;;  %s282_s24 = sshll.u32 %s259_s21, 4  ;;  %s283_s24 = int_to_ptr.vmem [resolvable:$true] %s282_s24 }
  0x42   : > { %s3060_s0 = sld [smem:[#allocation41_spill]]  ;;  %s2276_s26 = smov 512  }
  0x43   : > { %s1830_s13 = scalar_select %p2410_p3, [#allocation0], [#allocation20] }
  0x44   : > { %1831 = sst [smem:[#allocation15]] (%p2410_p3), %s2276_s26  ;;  %s2277_s12 = smov 256  }
  0x45   : > { %s272_s28 = sld [smem:[%s1830_s13]]   ;;  %s2278_s20 = smov 2  }
  0x46   : > { %1832 = sst [smem:[#allocation15 + $0x1]] (%p2410_p3), %s2277_s12  ;;  %s2279_s18 = smov 128  }
  0x47   : > { %1833 = sst [smem:[#allocation15 + $0x2]] (%p2410_p3), %s2278_s20  ;;  %s2280_s21 = smov 8  }
  0x48   : > { %s267_s5 = scalar_lea.hbm %s3060_s0, %s1606_s15  ;;  %1834 = sst [smem:[#allocation15 + $0x3]] (%p2410_p3), %s2279_s18 }
  0x49   : > { %s280_s3 = sshll.u32 %s267_s5, 4  ;;  %1835 = sst [smem:[#allocation15 + $0x4]] (%p2410_p3), %s2279_s18  ;;  %s281_s3 = int_to_ptr.hbm [resolvable:$true] %s280_s3 }
  0x4a   : > { %1836 = sst [smem:[#allocation15 + $0x5]] (%p2410_p3), %s2280_s21  ;;  %s256_s13 = scalar_lea.sflag [#allocation4], %s2503_s9 }
  0x4b   : > { %s1607_s15 = sshll.u32 %s272_s28, 26  ;;  %s2281_s11 = smov [#allocation14]  }
  0x4c   : > { %s1608_s26 = sadd.s32 134217728, %s1607_s15 }
  0x4d   : > { %1837 = dma.general (%p2410_p3), %s281_s3, 1024, %s283_s24, %s256_s13, %s2281_s11, [#allocation15], %s1608_s26, 0  }
  0x4e   : > { %s305_s5 = sand.u32 1, %s2271_s7   ;;  %s1824_s17 = smul.u32 96, %s2503_s9 }
  0x4f   : > { %s1825_s12 = smul.u32 6, %s2267_s30  ;;  %s2282_s11 = smov 768  }
  0x50   : > { %s1826_s20 = smul.u32 48, %s2263_s29  ;;  %s309_s15 = scalar_lea.vmem [#allocation6], %s1824_s17 }
  0x51   : > { %s1838_s28 = scalar_select %p2410_p3, [#allocation0], [#allocation21] }
  0x52   : > { %s316_s18 = sadd.s32 %s1826_s20, %s1825_s12  ;;  %s333_s21 = sshll.u32 %s309_s15, 4  ;;  %s334_s21 = int_to_ptr.vmem [resolvable:$true] %s333_s21 }
  0x53   : > { %s1613_s0 = sshll.u32 %s316_s18, 2  ;;  %s323_s24 = sld [smem:[%s1838_s28]]  }
  0x54   : > { %s318_s13 = scalar_lea.hbm %s3007_s1, %s1613_s0  ;;  %1839 = sst [smem:[#allocation17]] (%p2410_p3), %s2282_s11 }
  0x55   : > { %s331_s9 = sshll.u32 %s318_s13, 4  ;;  %s2283_s29 = smov 384   ;;  %s332_s9 = int_to_ptr.hbm [resolvable:$true] %s331_s9 }
  0x56   : > { %1840 = sst [smem:[#allocation17 + $0x1]] (%p2410_p3), %s2283_s29  ;;  %s2284_s12 = smov 2  }
  0x57   : > { %1841 = sst [smem:[#allocation17 + $0x2]] (%p2410_p3), %s2284_s12  ;;  %s2285_s28 = smov 192  }
  0x58   : > { %1842 = sst [smem:[#allocation17 + $0x3]] (%p2410_p3), %s2285_s28  ;;  %s2286_s0 = smov 12  }
  0x59   : > { %s1614_s17 = sshll.u32 %s323_s24, 26  ;;  %1843 = sst [smem:[#allocation17 + $0x4]] (%p2410_p3), %s2285_s28 }
  0x5a   : > { %s1615_s20 = sadd.s32 134217728, %s1614_s17  ;;  %1844 = sst [smem:[#allocation17 + $0x5]] (%p2410_p3), %s2286_s0 }
  0x5b   : > { %s306_s18 = scalar_lea.sflag [#allocation7], %s305_s5  ;;  %s2287_s15 = smov [#allocation16]  }
  0x5c   : > { %1845 = dma.general (%p2410_p3), %s332_s9, 1536, %s334_s21, %s306_s18, %s2287_s15, [#allocation17], %s1615_s20, 0  }
  0x5d   : > { %s358_s29 = sand.u32 1, %s2239_s23   ;;  %s1774_s24 = sshll.u32 %s2267_s30, 4 }
  0x5e   : > { %s1616_s3 = sshll.u32 %s358_s29, 4  ;;  %s365_s11 = scalar_lea.hbm %s3008_s2, %s1774_s24 }
  0x5f   : > { %s366_s17 = sshll.u32 %s365_s11, 4  ;;  %s360_s12 = scalar_lea.vmem [#allocation8], %s1616_s3  ;;  %s367_s17 = int_to_ptr.hbm [resolvable:$true] %s366_s17 }
  0x60   : > { %s368_s28 = sshll.u32 %s360_s12, 4  ;;  %s2288_s0 = smov 128   ;;  %s369_s28 = int_to_ptr.vmem [resolvable:$true] %s368_s28 }
  0x61   : > { %s2289_s5 = smov 8  }
  0x62   : > { %1846 = dma.hbm_to_vmem [thread:$0]  (%p2440_p12), %s367_s17, 256, %s369_s28, %s306_s18, %s2288_s0, %s2288_s0, %s2289_s5  }
  0x63 PF: > { %380 = sbr.rel (%p2493_p1) target bundleno = 971 (0x3cb), region = 40  ;;  %s2561_s14 = sand.u32 (!%p2493_p1), 1, %s2247_s25  }
  0x64   : > { %s1620_s21 = sshll.u32 (!%p2493_p1), %s2561_s14, 6  ;;  %s383_s9 = scalar_lea.sflag (!%p2493_p1), [#allocation4], %s2561_s14 }
  0x65   : > { %s2565_s20 = scalar_lea.vmem (!%p2493_p1), [#allocation3], %s1620_s21  ;;  %p3061_p3 = scmp.ne.s32.totalorder (!%p2493_p1), %s3043_s16, 0 }
  0x68   : > { %2206 = dma.done.wait (%p3061_p3), %s383_s9, 1024  }
  0x69   : > { %2208 = vsyncadd (%p3061_p3), %s383_s9, 4294966272  ;;  %s392_s10 = sand.u32 1, %s2391_s8   ;;  %s1827_s19 = smul.u32 96, %s2561_s14 }
  0x6a   : > { %s393_s18 = scalar_lea.sflag [#allocation7], %s392_s10 }
  0x6b   : > { %s2573_s15 = scalar_lea.vmem [#allocation6], %s1827_s19 }
  0x6c   : > { %2210 = dma.done.wait (%p3061_p3), %s393_s18, 1536  }
  0x6d   : > { %2212 = vsyncadd (%p3061_p3), %s393_s18, 4294965760  ;;  %s404_s29 = sand.u32 1, %s2235_s22   ;;  %p3062_p5 = scmp.ne.s32.totalorder %s3047_s6, 0 }
  0x6e   : > { %s1621_s24 = sshll.u32 %s404_s29, 4 }
  0x6f   : > { %s406_s3 = scalar_lea.vmem [#allocation8], %s1621_s24 }
  0x70   : > { %2214 = dma.done.wait (%p3062_p5), %s393_s18, 256  }
  0x71   : > { %2216 = vsyncadd (%p3062_p5), %s393_s18, 4294967040  ;;  %p3063_p12 = scmp.eq.s32.totalorder %s2391_s8, 0 }
  0x73   : > { %2218 = dma.done.wait (%p3063_p12), [#allocation10], 3072   ;;  %p3064_p13 = pmov %p3063_p12 }
  0x74   : > { %s1623_s16 = sshll.u32 %s2561_s14, 5  ;;  %s2593_s13 = scalar_lea.vmem [#allocation12], %s1621_s24 }
  0x75   : > { %2220 = vsyncadd (%p3064_p13), [#allocation10], 4294964224  ;;  %s2591_s26 = scalar_lea.vmem [#allocation11], %s1623_s16  ;;  %p1625_p10 = scmp.ne.s32.totalorder %s2255_s27, 0 }
  0x77   : > { %467 = sbr.rel (%p1625_p10) target bundleno = 127 (0x7f), region = 60 }
  0x7c   : > { %v468_v0 = vld [vmem:[%s406_s3] sm:$0xff]  ;;  %v469_v1 = vld [vmem:[%s406_s3 + $0x8] sm:$0xff] }
  0x7d   : > { %470 = vst [vmem:[#allocation2] sm:$0xff] %v468_v0 }
  0x7e   : > { %471 = vst [vmem:[#allocation2 + $0x8] sm:$0xff] %v469_v1 }
  0x7f PF: > { %v1712_v2 = vld [vmem:[#allocation9 + $0xa8] sm:$0xf]  ;;  %v1797_v3 = vld [vmem:[#allocation9 + $0xb0] sm:$0xf0]  ;;  %v1796_v4 = vld [vmem:[#allocation9 + $0xac] sm:$0xf] }
  0x80   : > { %v2596_v5 = vor.u32 %v1797_v3, %v1712_v2  ;;  %v1714_v6 = vld [vmem:[#allocation9 + $0xb4] sm:$0xf0]  ;;  %v1700_v7 = vld [vmem:[#allocation9 + $0x90] sm:$0xf]  ;;  %v1794_v8 = vld [vmem:[#allocation9 + $0x98] sm:$0xf0] }
  0x81   : > { %v2598_v9 = vor.u32 %v1796_v4, %v1714_v6  ;;  %v1793_v10 = vld [vmem:[#allocation9 + $0x94] sm:$0xf]  ;;  %v1702_v11 = vld [vmem:[#allocation9 + $0x9c] sm:$0xf0]  ;;  %v2601_v12 = vor.u32 %v1794_v8, %v1700_v7  ;;  %v1688_v14 = vld [vmem:[#allocation9 + $0x78] sm:$0xf] }
  0x82   : > { %648 = vmatpush.bf16.msra.mxu0 %v2596_v5  ;;  %829 = vmatpush.bf16.msra.mxu3 %v2596_v5  ;;  %v2605_v13 = vor.u32 %v1793_v10, %v1702_v11  ;;  %v1791_v15 = vld [vmem:[#allocation9 + $0x80] sm:$0xf0]  ;;  %v1790_v16 = vld [vmem:[#allocation9 + $0x7c] sm:$0xf]  ;;  %v1690_v17 = vld [vmem:[#allocation9 + $0x84] sm:$0xf0] }
  0x83   : > { %662 = vmatpush.bf16.msra.mxu1 %v2598_v9  ;;  %v1720_v18 = vld [vmem:[#allocation9 + $0xb0] sm:$0xf]  ;;  %v1798_v19 = vld [vmem:[#allocation9 + $0xb8] sm:$0xf0]  ;;  %v2610_v21 = vor.u32 %v1791_v15, %v1688_v14  ;;  %v1708_v22 = vld [vmem:[#allocation9 + $0x98] sm:$0xf]  ;;  %v2614_v24 = vor.u32 %v1790_v16, %v1690_v17 }
  0x84   : > { %v2607_v20 = vor.u32 %v1798_v19, %v1720_v18  ;;  %v1795_v23 = vld [vmem:[#allocation9 + $0xa0] sm:$0xf0]  ;;  %v1676_v25 = vld [vmem:[#allocation9 + $0x60] sm:$0xf]  ;;  %v1788_v26 = vld [vmem:[#allocation9 + $0x68] sm:$0xf0] }
  0x85   : > { %v1787_v27 = vld [vmem:[#allocation9 + $0x64] sm:$0xf]  ;;  %v2617_v28 = vor.u32 %v1795_v23, %v1708_v22  ;;  %v1678_v29 = vld [vmem:[#allocation9 + $0x6c] sm:$0xf0]  ;;  %v1696_v30 = vld [vmem:[#allocation9 + $0x80] sm:$0xf]  ;;  %v2620_v32 = vor.u32 %v1788_v26, %v1676_v25 }
  0x86   : > { %649 = vmatpush.bf16.msra.mxu0 %v2601_v12  ;;  %830 = vmatpush.bf16.msra.mxu3 %v2601_v12  ;;  %v1792_v31 = vld [vmem:[#allocation9 + $0x88] sm:$0xf0]  ;;  %v2624_v33 = vor.u32 %v1787_v27, %v1678_v29  ;;  %v1664_v34 = vld [vmem:[#allocation9 + $0x48] sm:$0xf]  ;;  %v1785_v35 = vld [vmem:[#allocation9 + $0x50] sm:$0xf0] }
  0x87   : > { %663 = vmatpush.bf16.msra.mxu1 %v2605_v13  ;;  %676 = vmatpush.bf16.msra.mxu2 %v2607_v20  ;;  %v1784_v36 = vld [vmem:[#allocation9 + $0x4c] sm:$0xf]  ;;  %v2627_v37 = vor.u32 %v1792_v31, %v1696_v30  ;;  %v1666_v38 = vld [vmem:[#allocation9 + $0x54] sm:$0xf0]  ;;  %v1684_v39 = vld [vmem:[#allocation9 + $0x68] sm:$0xf]  ;;  %v2630_v41 = vor.u32 %v1785_v35, %v1664_v34 }
  0x88   : > { %v1789_v40 = vld [vmem:[#allocation9 + $0x70] sm:$0xf0]  ;;  %v1652_v42 = vld [vmem:[#allocation9 + $0x30] sm:$0xf]  ;;  %v2290_v43 = vmov 0   ;;  %v2633_v44 = vor.u32 %v1784_v36, %v1666_v38  ;;  %v517_v48 = vld [vmem:[%s2565_s20] sm:$0xff] }
  0x89   : > { %1991 = vset.pattern.permute.xlu0 %v2290_v43  ;;  %v1782_v45 = vld [vmem:[#allocation9 + $0x38] sm:$0xf0]  ;;  %v1781_v46 = vld [vmem:[#allocation9 + $0x34] sm:$0xf]  ;;  %v2636_v47 = vor.u32 %v1789_v40, %v1684_v39  ;;  %v1654_v49 = vld [vmem:[#allocation9 + $0x3c] sm:$0xf0]  ;;  %1992 = vset.pattern.permute.xlu1 %v2290_v43 }
  0x8a   : > { %650 = vmatpush.bf16.msra.mxu0 %v2610_v21  ;;  %831 = vmatpush.bf16.msra.mxu3 %v2610_v21  ;;  %v1672_v50 = vld [vmem:[#allocation9 + $0x50] sm:$0xf]  ;;  %v1786_v51 = vld [vmem:[#allocation9 + $0x58] sm:$0xf0]  ;;  %v2641_v52 = vor.u32 %v1782_v45, %v1652_v42  ;;  %v2644_v53 = vor.u32 %v1781_v46, %v1654_v49  ;;  %v1640_v54 = vld [vmem:[#allocation9 + $0x18] sm:$0xf] }
  0x8b   : > { %664 = vmatpush.bf16.msra.mxu1 %v2614_v24  ;;  %677 = vmatpush.bf16.msra.mxu2 %v2617_v28  ;;  %v1779_v55 = vld [vmem:[#allocation9 + $0x20] sm:$0xf0]  ;;  %v1778_v56 = vld [vmem:[#allocation9 + $0x1c] sm:$0xf]  ;;  %v2647_v57 = vor.u32 %v1786_v51, %v1672_v50  ;;  %v1642_v58 = vld [vmem:[#allocation9 + $0x24] sm:$0xf0] }
  0x8c   : > { %793 = vperm.xlu0 %1991, %v517_v48   ;;  %1993 = vset.pattern.permute.xlu2 %v2290_v43  ;;  %v1660_v59 = vld [vmem:[#allocation9 + $0x38] sm:$0xf]  ;;  %v1783_v60 = vld [vmem:[#allocation9 + $0x40] sm:$0xf0]  ;;  %v518_v61 = vld [vmem:[%s2565_s20 + $0x8] sm:$0xff]  ;;  %v2652_v62 = vor.u32 %v1779_v55, %v1640_v54  ;;  %v2655_v63 = vor.u32 %v1778_v56, %v1642_v58  ;;  %p1762_p1 = scmp.ne.s32.totalorder %s2255_s27, 2 }
  0x8d   : > { %v1628_v0 = vld [vmem:[#allocation9] sm:$0xf]  ;;  %v1776_v1 = vld [vmem:[#allocation9 + $0x8] sm:$0xf0]  ;;  %v1775_v2 = vld [vmem:[#allocation9 + $0x4] sm:$0xf]  ;;  %v2658_v3 = vor.u32 %v1783_v60, %v1660_v59 }
  0x8e   : > { %651 = vmatpush.bf16.msra.mxu0 %v2620_v32  ;;  %832 = vmatpush.bf16.msra.mxu3 %v2620_v32  ;;  %v1630_v4 = vld [vmem:[#allocation9 + $0xc] sm:$0xf0]  ;;  %v1648_v6 = vld [vmem:[#allocation9 + $0x20] sm:$0xf]  ;;  %v1780_v7 = vld [vmem:[#allocation9 + $0x28] sm:$0xf0]  ;;  %v2662_v8 = vor.u32 %v1776_v1, %v1628_v0 }
  0x8f   : > { %665 = vmatpush.bf16.msra.mxu1 %v2624_v33  ;;  %678 = vmatpush.bf16.msra.mxu2 %v2627_v37  ;;  %v2664_v10 = vld [vmem:[#allocation2] sm:$0xff]  ;;  %v2666_v11 = vld [vmem:[#allocation2 + $0x8] sm:$0xff]  ;;  %v2669_v14 = vor.u32 %v1775_v2, %v1630_v4  ;;  %v2672_v15 = vor.u32 %v1780_v7, %v1648_v6  ;;  %v1636_v16 = vld [vmem:[#allocation9 + $0x8] sm:$0xf] }
  0x90   : > { %v1777_v17 = vld [vmem:[#allocation9 + $0x10] sm:$0xf0]  ;;  %v519_v18 = vpack.c.bf16 %v2666_v11, %v2664_v10  ;;  %v509_v25 = vld [vmem:[%s2573_s15 + $0xc] sm:$0xff]  ;;  %v508_v59 = vld [vmem:[%s2573_s15 + $0x8] sm:$0xf] }
  0x91   : > { %v1754_v19 = vld [vmem:[%s2565_s20 + $0x30] sm:$0xff]  ;;  %v2681_v22 = vor.u32 %v1777_v17, %v1636_v16  ;;  %v514_v29 = vunpack.c.l.bf16 %v509_v25  ;;  %v515_v30 = vunpack.c.h.bf16 %v509_v25  ;;  %v513_v1 = vunpack.c.l.bf16 %v508_v59 }
  0x92   : > { %652 = vmatpush.bf16.msra.mxu0 %v2630_v41  ;;  %833 = vmatpush.bf16.msra.mxu3 %v2630_v41 }
  0x93   : > { %666 = vmatpush.bf16.msra.mxu1 %v2633_v44  ;;  %679 = vmatpush.bf16.msra.mxu2 %v2636_v47 }
  0x94   : > { %798 = vperm.xlu0 %1991, %v518_v61  }
  0x96   : > { %653 = vmatpush.bf16.msra.mxu0 %v2641_v52  ;;  %834 = vmatpush.bf16.msra.mxu3 %v2641_v52 }
  0x97   : > { %667 = vmatpush.bf16.msra.mxu1 %v2644_v53  ;;  %680 = vmatpush.bf16.msra.mxu2 %v2647_v57 }
  0x9a   : > { %654 = vmatpush.bf16.msra.mxu0 %v2652_v62  ;;  %835 = vmatpush.bf16.msra.mxu3 %v2652_v62 }
  0x9b   : > { %668 = vmatpush.bf16.msra.mxu1 %v2655_v63  ;;  %681 = vmatpush.bf16.msra.mxu2 %v2658_v3 }
  0x9c   : > { %1329 = vperm.xlu0 %1991, %v1754_v19  }
  0x9e   : > { %655 = vmatpush.bf16.msra.mxu0 %v2662_v8  ;;  %836 = vmatpush.bf16.msra.mxu3 %v2662_v8 }
  0x9f   : > { %669 = vmatpush.bf16.msra.mxu1 %v2669_v14  ;;  %682 = vmatpush.bf16.msra.mxu2 %v2672_v15 }
  0xa1   : > { %656 = vmatmul.bf16.vlgmr.msra.gmra.mxu0 %v519_v18 }
  0xa2   : > { %843 = vmatpush.bf16.msrb.mxu0 %v2598_v9  ;;  %670 = vmatmul.bf16.vlgmr.msra.gmra.mxu1 %v519_v18 }
  0xa3   : > { %857 = vmatpush.bf16.msrb.mxu1 %v2607_v20  ;;  %683 = vmatpush.bf16.msra.mxu2 %v2681_v22 }
  0xa4   : > { %1022 = vmatpush.bf16.msrb.mxu3 %v2598_v9 }
  0xa6   : > { %844 = vmatpush.bf16.msrb.mxu0 %v2605_v13  ;;  %684 = vmatmul.bf16.vlgmr.msra.gmra.mxu2 %v519_v18 }
  0xa7   : > { %1008 = vmatpush.bf16.msrb.mxu2 %v2596_v5  ;;  %858 = vmatpush.bf16.msrb.mxu1 %v2617_v28 }
  0xa8   : > { %1023 = vmatpush.bf16.msrb.mxu3 %v2605_v13 }
  0xaa   : > { %845 = vmatpush.bf16.msrb.mxu0 %v2614_v24 }
  0xab   : > { %1009 = vmatpush.bf16.msrb.mxu2 %v2601_v12  ;;  %859 = vmatpush.bf16.msrb.mxu1 %v2627_v37 }
  0xac   : > { %1024 = vmatpush.bf16.msrb.mxu3 %v2614_v24 }
  0xae   : > { %846 = vmatpush.bf16.msrb.mxu0 %v2624_v33 }
  0xaf   : > { %1010 = vmatpush.bf16.msrb.mxu2 %v2610_v21  ;;  %860 = vmatpush.bf16.msrb.mxu1 %v2636_v47 }
  0xb0   : > { %1025 = vmatpush.bf16.msrb.mxu3 %v2624_v33 }
  0xb2   : > { %847 = vmatpush.bf16.msrb.mxu0 %v2633_v44 }
  0xb3   : > { %1011 = vmatpush.bf16.msrb.mxu2 %v2620_v32  ;;  %861 = vmatpush.bf16.msrb.mxu1 %v2647_v57 }
  0xb4   : > { %1026 = vmatpush.bf16.msrb.mxu3 %v2633_v44 }
  0xb6   : > { %848 = vmatpush.bf16.msrb.mxu0 %v2644_v53 }
  0xb7   : > { %1012 = vmatpush.bf16.msrb.mxu2 %v2630_v41  ;;  %862 = vmatpush.bf16.msrb.mxu1 %v2658_v3 }
  0xb8   : > { %1027 = vmatpush.bf16.msrb.mxu3 %v2644_v53 }
  0xba   : > { %849 = vmatpush.bf16.msrb.mxu0 %v2655_v63 }
  0xbb   : > { %1013 = vmatpush.bf16.msrb.mxu2 %v2641_v52  ;;  %863 = vmatpush.bf16.msrb.mxu1 %v2672_v15 }
  0xbc   : > { %1028 = vmatpush.bf16.msrb.mxu3 %v2655_v63 }
  0xbe   : > { %850 = vmatpush.bf16.msrb.mxu0 %v2669_v14 }
  0xbf   : > { %1014 = vmatpush.bf16.msrb.mxu2 %v2652_v62  ;;  %864 = vmatpush.bf16.msrb.mxu1 %v2681_v22 }
  0xc0   : > { %1029 = vmatpush.bf16.msrb.mxu3 %v2669_v14 }
  0xc2   : > { %1036 = vmatpush.bf16.msra.mxu0 %v2607_v20 }
  0xc3   : > { %1187 = vmatpush.bf16.msra.mxu1 %v2596_v5  ;;  %1015 = vmatpush.bf16.msrb.mxu2 %v2662_v8  ;;  %v507_v5 = vld [vmem:[%s2573_s15] sm:$0xff] }
  0xc6   : > { %1037 = vmatpush.bf16.msra.mxu0 %v2617_v28 }
  0xc7   : > { %1201 = vmatpush.bf16.msra.mxu2 %v2598_v9  ;;  %1188 = vmatpush.bf16.msra.mxu1 %v2601_v12  ;;  %v511_v9 = vunpack.c.l.bf16 %v507_v5  ;;  %v512_v12 = vunpack.c.h.bf16 %v507_v5 }
  0xca   : > { %1038 = vmatpush.bf16.msra.mxu0 %v2627_v37 }
  0xcb   : > { %1202 = vmatpush.bf16.msra.mxu2 %v2605_v13  ;;  %1189 = vmatpush.bf16.msra.mxu1 %v2610_v21 }
  0xce   : > { %1039 = vmatpush.bf16.msra.mxu0 %v2636_v47 }
  0xcf   : > { %1203 = vmatpush.bf16.msra.mxu2 %v2614_v24  ;;  %1190 = vmatpush.bf16.msra.mxu1 %v2620_v32 }
  0xd2   : > { %1040 = vmatpush.bf16.msra.mxu0 %v2647_v57 }
  0xd3   : > { %1204 = vmatpush.bf16.msra.mxu2 %v2624_v33  ;;  %1191 = vmatpush.bf16.msra.mxu1 %v2630_v41 }
  0xd6   : > { %1041 = vmatpush.bf16.msra.mxu0 %v2658_v3 }
  0xd7   : > { %1205 = vmatpush.bf16.msra.mxu2 %v2633_v44  ;;  %1192 = vmatpush.bf16.msra.mxu1 %v2641_v52  ;;  %v2755_v52 = vld [vmem:[%s3010_s4] ss:$0 sm:$0xff] }
  0xda   : > { %1042 = vmatpush.bf16.msra.mxu0 %v2672_v15 }
  0xdb   : > { %1206 = vmatpush.bf16.msra.mxu2 %v2644_v53  ;;  %1193 = vmatpush.bf16.msra.mxu1 %v2652_v62 }
  0xde   : > { %1043 = vmatpush.bf16.msra.mxu0 %v2681_v22 }
  0xdf   : > { %1207 = vmatpush.bf16.msra.mxu2 %v2655_v63  ;;  %1194 = vmatpush.bf16.msra.mxu1 %v2662_v8 }
  0xe3   : > { %1208 = vmatpush.bf16.msra.mxu2 %v2669_v14 }
 0x11e   : > { %v657_v13 = vpop.f32.mrf.mxu0 }
 0x11f   : > { %v690_v21 = vadd.f32 %v657_v13, %v511_v9  ;;  %v671_v23 = vpop.f32.mrf.mxu1 }
 0x120   : > { %v691_v24 = vadd.f32 %v671_v23, %v512_v12  ;;  %v510_v12 = vld [vmem:[%s2573_s15 + $0x14] sm:$0xf] }
 0x121   : > { %v1722_v26 = vmul.f32 -1.442695, %v690_v21 }
 0x122   : > { %v1723_v27 = vmul.f32 -1.442695, %v691_v24 }
 0x123   : > { %1995 = vpow2.f32 %v1722_v26 }
 0x124   : > { %1997 = vpow2.f32 %v1723_v27 }
 0x126   : > { %v659_v31 = vpop.f32.mrf.mxu0 }
 0x127   : > { %v692_v32 = vadd.f32 %v659_v31, %v514_v29  ;;  %v673_v33 = vpop.f32.mrf.mxu1  ;;  %v516_v31 = vunpack.c.l.bf16 %v510_v12  ;;  %v1728_v12 = vld [vmem:[%s2573_s15 + $0x24] sm:$0xff] }
 0x128   : > { %v693_v34 = vadd.f32 %v673_v33, %v515_v30  ;;  %v1730_v30 = vld [vmem:[%s2565_s20 + $0x10] sm:$0xff] }
 0x129   : > { %v1996_v35 = vpop.eup %1995  ;;  %v1724_v36 = vmul.f32 -1.442695, %v692_v32  ;;  %v685_v54 = vpop.f32.mrf.mxu2  ;;  %971 = vperm.xlu1 %1992, %v1730_v30  }
 0x12a   : > { %v1998_v38 = vpop.eup %1997  ;;  %v706_v39 = vadd.f32 1.0, %v1996_v35  ;;  %v1725_v40 = vmul.f32 -1.442695, %v693_v34  ;;  %v773_v62 = vadd.f32 %v2755_v52, %v685_v54 }
 0x12b   : > { %v2743_v41 = vadd.f32 1.0, %v1998_v38  ;;  %1999 = vpow2.f32 %v1724_v36 }
 0x12c   : > { %2001 = vrcp.f32 %v706_v39  ;;  %v721_v55 = vand.u32 2147483648, %v706_v39  ;;  %v719_v58 = vand.u32 2147483647, %v706_v39  ;;  %vm715_vm1 = vweird.f32 %v706_v39 }
 0x12d   : > { %2003 = vrcp.f32 %v2743_v41  ;;  %vm730_vm4 = vweird.f32 %v2743_v41  ;;  %v736_v17 = vand.u32 2147483648, %v2743_v41  ;;  %v734_v5 = vand.u32 2147483647, %v2743_v41 }
 0x12e   : > { %2005 = vpow2.f32 %v1725_v40  ;;  %v722_v0 = vor.u32 1.1754944e-38, %v721_v55  ;;  %vm720_vm3 = vcmp.eq.f32.partialorder %v719_v58, 8.507059e+37  ;;  %v794_v55 = vpop.permute.xlu0 %793 }
 0x12f   : > { %v737_v29 = vor.u32 1.1754944e-38, %v736_v17  ;;  %vm735_vm10 = vcmp.eq.f32.partialorder %v734_v5, 8.507059e+37 }
 0x131   : > { %v2000_v42 = vpop.eup %1999  ;;  %v687_v25 = vpop.f32.mrf.mxu2 }
 0x132   : > { %v2002_v43 = vpop.eup %2001  ;;  %v708_v44 = vadd.f32 1.0, %v2000_v42  ;;  %v774_v35 = vadd.f32 %v2755_v52, %v687_v25 }
 0x133   : > { %v2746_v45 = vpop.eup %2003  ;;  %v711_v46 = vmul.f32 %v2002_v43, %v706_v39  ;;  %vm716_vm0 = vweird.f32 %v2002_v43 }
 0x134   : > { %v2006_v48 = vpop.eup %2005  ;;  %v726_v49 = vmul.f32 %v2746_v45, %v2743_v41  ;;  %2007 = vrcp.f32 %v708_v44  ;;  %vm717_vm2 = vmor %vm715_vm1, %vm716_vm0  ;;  %vm731_vm5 = vweird.f32 %v2746_v45  ;;  %v751_v19 = vand.u32 2147483648, %v708_v44 }
 0x135   : > { %v2750_v50 = vadd.f32 1.0, %v2006_v48  ;;  %v712_v51 = vsub.f32 1.0, %v711_v46  ;;  %v749_v21 = vand.u32 2147483647, %v708_v44  ;;  %vm2768_vm7 = vmor %vm730_vm4, %vm731_vm5  ;;  %vm745_vm8 = vweird.f32 %v708_v44  ;;  %v1731_v46 = vld [vmem:[%s2565_s20 + $0x18] sm:$0xff] }
 0x136   : > { %v727_v53 = vsub.f32 1.0, %v726_v49  ;;  %v752_v32 = vor.u32 1.1754944e-38, %v751_v19  ;;  %976 = vperm.xlu1 %1992, %v1731_v46  }
 0x137   : > { %2009 = vrcp.f32 %v2750_v50  ;;  %v713_v56 = vmul.f32 %v2002_v43, %v712_v51  ;;  %vm750_vm11 = vcmp.eq.f32.partialorder %v749_v21, 8.507059e+37  ;;  %v766_v41 = vand.u32 2147483648, %v2750_v50 }
 0x138   : > { %v728_v60 = vmul.f32 %v2746_v45, %v727_v53  ;;  %vm760_vm13 = vweird.f32 %v2750_v50 }
 0x139   : > { %v714_v61 = vadd.f32 %v2002_v43, %v713_v56  ;;  %v767_v53 = vor.u32 1.1754944e-38, %v766_v41 }
 0x13a   : > { %v2008_v63 = vpop.eup %2007  ;;  %v729_v7 = vadd.f32 %v2746_v45, %v728_v60  ;;  %v1755_v60 = vld [vmem:[%s2565_s20 + $0x38] sm:$0xff] }
 0x13b   : > { %v718_v2 = vsel %vm717_vm2, %v2002_v43, %v714_v61  ;;  %v741_v4 = vmul.f32 %v2008_v63, %v708_v44  ;;  %vm746_vm6 = vweird.f32 %v2008_v63  ;;  %v764_v43 = vand.u32 2147483647, %v2750_v50 }
 0x13c   : > { %v723_v6 = vsel %vm720_vm3, %v722_v0, %v718_v2  ;;  %v733_v26 = vsel %vm2768_vm7, %v2746_v45, %v729_v7  ;;  %vm747_vm9 = vmor %vm745_vm8, %vm746_vm6 }
 0x13d   : > { %v2010_v8 = vpop.eup %2009  ;;  %v775_v14 = vmul.f32 %v773_v62, %v723_v6  ;;  %v742_v16 = vsub.f32 1.0, %v741_v4  ;;  %v738_v36 = vsel %vm735_vm10, %v737_v29, %v733_v26  ;;  %vm765_vm15 = vcmp.eq.f32.partialorder %v764_v43, 8.507059e+37  ;;  %v799_v4 = vpop.permute.xlu0 %798 }
 0x13e   : > { %v756_v18 = vmul.f32 %v2010_v8, %v2750_v50  ;;  %vm761_vm12 = vweird.f32 %v2010_v8  ;;  %v781_v42 = vsub.f32 1.0, %v738_v36  ;;  %v785_v49 = vmul.f32 %v738_v36, %v2664_v10  ;;  %1334 = vperm.xlu1 %1992, %v1755_v60  }
 0x13f   : > { %v777_v9 = vadd.f32 %v775_v14, %v513_v1  ;;  %v743_v13 = vmul.f32 %v2008_v63, %v742_v16  ;;  %vm762_vm14 = vmor %vm760_vm13, %vm761_vm12 }
 0x140   : > { %v757_v24 = vsub.f32 1.0, %v756_v18 }
 0x141   : > { %2011 = vtanh.f32 %v777_v9  ;;  %v744_v27 = vadd.f32 %v2008_v63, %v743_v13 }
 0x142   : > { %v758_v33 = vmul.f32 %v2010_v8, %v757_v24 }
 0x143   : > { %v748_v34 = vsel %vm747_vm9, %v2008_v63, %v744_v27 }
 0x144   : > { %v753_v38 = vsel %vm750_vm11, %v752_v32, %v748_v34  ;;  %v759_v39 = vadd.f32 %v2010_v8, %v758_v33 }
 0x145   : > { %v776_v40 = vmul.f32 %v774_v35, %v753_v38 }
 0x146   : > { %v763_v51 = vsel %vm762_vm14, %v2010_v8, %v759_v39 }
 0x147   : > { %v2012_v44 = vpop.eup %2011  ;;  %v778_v45 = vadd.f32 %v776_v40, %v516_v31  ;;  %v768_v56 = vsel %vm765_vm15, %v767_v53, %v763_v51 }
 0x148   : > { %v783_v48 = vmul.f32 %v2012_v44, %v781_v42  ;;  %v782_v59 = vsub.f32 1.0, %v768_v56  ;;  %v786_v63 = vmul.f32 %v768_v56, %v2666_v11 }
 0x149   : > { %2013 = vtanh.f32 %v778_v45 }
 0x14a   : > { %v787_v54 = vadd.f32 %v785_v49, %v783_v48  ;;  %v1727_v49 = vld [vmem:[%s2573_s15 + $0x20] sm:$0xf] }
 0x14c   : > { %v789_v58 = vsub.f32 %v787_v54, %v2664_v10 }
 0x14e   : > { %v801_v61 = vmul.f32 %v794_v55, %v789_v58 }
 0x14f   : > { %v2014_v50 = vpop.eup %2013 }
 0x150   : > { %v784_v62 = vmul.f32 %v2014_v50, %v782_v59  ;;  %v2786_v1 = vadd.f32 %v801_v61, %v2664_v10  ;;  %v816_v50 = vunpack.c.l.bf16 %v1727_v49 }
 0x152   : > { %v788_v0 = vadd.f32 %v786_v63, %v784_v62  ;;  %v805_v8 = vpack.c.bf16 %v2786_v1, %v2786_v1 }
 0x154   : > { %v790_v2 = vsub.f32 %v788_v0, %v2666_v11  ;;  %v825_v10 = vunpack.c.l.b16 %v805_v8 }
 0x156   : > { %v802_v6 = vmul.f32 %v799_v4, %v790_v2 }
 0x158   : > { %v2790_v7 = vadd.f32 %v802_v6, %v2666_v11  ;;  %v1726_v11 = vld [vmem:[%s2573_s15 + $0x18] sm:$0xff] }
 0x159   : > { %v815_v19 = vunpack.c.h.bf16 %v1726_v11  ;;  %v814_v13 = vunpack.c.l.bf16 %v1726_v11  ;;  %v1729_v11 = vld [vmem:[%s2573_s15 + $0x2c] sm:$0xf] }
 0x15a   : > { %v1804_v14 = vpack.c.bf16 %v2790_v7, %v2786_v1  ;;  %v806_v16 = vpack.c.bf16 %v2790_v7, %v2790_v7 }
 0x15c   : > { %1805 = vst [vmem:[%s2591_s26] sm:$0xff] %v1804_v14   ;;  %v826_v17 = vunpack.c.l.b16 %v806_v16 }
 0x15e   : > { %v827_v18 = vpack.c.b16 %v826_v17, %v825_v10 }
 0x160   : > { %837 = vmatmul.bf16.vlgmr.msra.gmra.mxu3 %v827_v18  ;;  %851 = vmatmul.bf16.vlgmr.msrb.gmra.mxu0 %v827_v18 }
 0x161   : > { %865 = vmatmul.bf16.vlgmr.msrb.gmra.mxu1 %v827_v18  ;;  %1215 = vmatpush.bf16.msra.mxu3 %v2607_v20 }
 0x165   : > { %1216 = vmatpush.bf16.msra.mxu3 %v2617_v28  ;;  %v818_v28 = vunpack.c.h.bf16 %v1728_v12 }
 0x169   : > { %1217 = vmatpush.bf16.msra.mxu3 %v2627_v37 }
 0x16d   : > { %1218 = vmatpush.bf16.msra.mxu3 %v2636_v47 }
 0x171   : > { %1219 = vmatpush.bf16.msra.mxu3 %v2647_v57 }
 0x175   : > { %1220 = vmatpush.bf16.msra.mxu3 %v2658_v3 }
 0x179   : > { %1221 = vmatpush.bf16.msra.mxu3 %v2672_v15  ;;  %v817_v15 = vunpack.c.l.bf16 %v1728_v12  ;;  %v1742_v12 = vld [vmem:[%s2565_s20 + $0x20] sm:$0xff] }
 0x17a   : > { %1150 = vperm.xlu2 %1993, %v1742_v12  }
 0x17d   : > { %1222 = vmatpush.bf16.msra.mxu3 %v2681_v22 }
 0x1dd   : > { %v852_v5 = vpop.f32.mrf.mxu0 }
 0x1de   : > { %v872_v9 = vadd.f32 %v852_v5, %v815_v19  ;;  %v866_v42 = vpop.f32.mrf.mxu1 }
 0x1df   : > { %v951_v55 = vadd.f32 %v2755_v52, %v866_v42 }
 0x1e0   : > { %v1733_v20 = vmul.f32 -1.442695, %v872_v9 }
 0x1e2   : > { %2015 = vpow2.f32 %v1733_v20 }
 0x1e3   : > { %v838_v37 = vpop.f32.mrf.mxu3 }
 0x1e4   : > { %v871_v21 = vadd.f32 %v838_v37, %v814_v13 }
 0x1e5   : > { %v854_v47 = vpop.f32.mrf.mxu0 }
 0x1e6   : > { %v1732_v23 = vmul.f32 -1.442695, %v871_v21  ;;  %v874_v57 = vadd.f32 %v854_v47, %v818_v28  ;;  %v868_v8 = vpop.f32.mrf.mxu1  ;;  %v819_v21 = vunpack.c.l.bf16 %v1729_v11 }
 0x1e7   : > { %v952_v20 = vadd.f32 %v2755_v52, %v868_v8 }
 0x1e8   : > { %v2016_v24 = vpop.eup %2015  ;;  %2017 = vpow2.f32 %v1732_v23  ;;  %v1735_v3 = vmul.f32 -1.442695, %v874_v57 }
 0x1e9   : > { %v2809_v25 = vadd.f32 1.0, %v2016_v24 }
 0x1ea   : > { %2019 = vpow2.f32 %v1735_v3 }
 0x1eb   : > { %v840_v22 = vpop.f32.mrf.mxu3  ;;  %2021 = vrcp.f32 %v2809_v25  ;;  %v917_v0 = vand.u32 2147483648, %v2809_v25  ;;  %vm911_vm5 = vweird.f32 %v2809_v25  ;;  %v915_v6 = vand.u32 2147483647, %v2809_v25 }
 0x1ec   : > { %v873_v26 = vadd.f32 %v840_v22, %v817_v15 }
 0x1ed   : > { %v918_v9 = vor.u32 1.1754944e-38, %v917_v0  ;;  %vm916_vm10 = vcmp.eq.f32.partialorder %v915_v6, 8.507059e+37 }
 0x1ee   : > { %v2018_v27 = vpop.eup %2017  ;;  %v1734_v29 = vmul.f32 -1.442695, %v873_v26  ;;  %v1743_v26 = vld [vmem:[%s2565_s20 + $0x28] sm:$0xff] }
 0x1ef   : > { %v887_v30 = vadd.f32 1.0, %v2018_v27  ;;  %1155 = vperm.xlu2 %1993, %v1743_v26  }
 0x1f0   : > { %v2020_v31 = vpop.eup %2019  ;;  %2023 = vpow2.f32 %v1734_v29 }
 0x1f1   : > { %2025 = vrcp.f32 %v887_v30  ;;  %v2812_v32 = vpop.eup %2021  ;;  %v2814_v33 = vadd.f32 1.0, %v2020_v31  ;;  %v902_v44 = vand.u32 2147483648, %v887_v30  ;;  %v900_v46 = vand.u32 2147483647, %v887_v30 }
 0x1f2   : > { %v907_v34 = vmul.f32 %v2812_v32, %v2809_v25  ;;  %vm896_vm1 = vweird.f32 %v887_v30  ;;  %vm912_vm4 = vweird.f32 %v2812_v32 }
 0x1f3   : > { %2027 = vrcp.f32 %v2814_v33  ;;  %v903_v56 = vor.u32 1.1754944e-38, %v902_v44  ;;  %vm901_vm3 = vcmp.eq.f32.partialorder %v900_v46, 8.507059e+37  ;;  %vm2831_vm7 = vmor %vm911_vm5, %vm912_vm4  ;;  %v947_v57 = vand.u32 2147483648, %v2814_v33 }
 0x1f4   : > { %v908_v40 = vsub.f32 1.0, %v907_v34  ;;  %vm941_vm13 = vweird.f32 %v2814_v33  ;;  %v945_v15 = vand.u32 2147483647, %v2814_v33  ;;  %v972_v34 = vpop.permute.xlu1 %971 }
 0x1f5   : > { %v948_v31 = vor.u32 1.1754944e-38, %v947_v57 }
 0x1f6   : > { %v2024_v35 = vpop.eup %2023  ;;  %v909_v51 = vmul.f32 %v2812_v32, %v908_v40  ;;  %vm946_vm15 = vcmp.eq.f32.partialorder %v945_v15, 8.507059e+37 }
 0x1f7   : > { %v2026_v36 = vpop.eup %2025  ;;  %v889_v38 = vadd.f32 1.0, %v2024_v35 }
 0x1f8   : > { %v892_v39 = vmul.f32 %v2026_v36, %v887_v30  ;;  %vm897_vm0 = vweird.f32 %v2026_v36  ;;  %v910_v62 = vadd.f32 %v2812_v32, %v909_v51 }
 0x1f9   : > { %2029 = vrcp.f32 %v889_v38  ;;  %v2819_v41 = vpop.eup %2027  ;;  %vm898_vm2 = vmor %vm896_vm1, %vm897_vm0  ;;  %v932_v4 = vand.u32 2147483648, %v889_v38  ;;  %v930_v16 = vand.u32 2147483647, %v889_v38  ;;  %vm926_vm8 = vweird.f32 %v889_v38 }
 0x1fa   : > { %v893_v43 = vsub.f32 1.0, %v892_v39  ;;  %v937_v48 = vmul.f32 %v2819_v41, %v2814_v33  ;;  %v914_v18 = vsel %vm2831_vm7, %v2812_v32, %v910_v62  ;;  %vm942_vm12 = vweird.f32 %v2819_v41  ;;  %v1740_v62 = vld [vmem:[%s2573_s15 + $0x3c] sm:$0xff] }
 0x1fb   : > { %v933_v13 = vor.u32 1.1754944e-38, %v932_v4  ;;  %vm931_vm11 = vcmp.eq.f32.partialorder %v930_v16, 8.507059e+37  ;;  %v919_v37 = vsel %vm916_vm10, %v918_v9, %v914_v18  ;;  %vm943_vm14 = vmor %vm941_vm13, %vm942_vm12  ;;  %v997_v4 = vunpack.c.h.bf16 %v1740_v62 }
 0x1fc   : > { %v894_v45 = vmul.f32 %v2026_v36, %v893_v43  ;;  %v938_v60 = vsub.f32 1.0, %v937_v48  ;;  %v959_v3 = vsub.f32 1.0, %v919_v37  ;;  %v963_v29 = vmul.f32 %v919_v37, %v2786_v1 }
 0x1fe   : > { %v895_v53 = vadd.f32 %v2026_v36, %v894_v45  ;;  %v939_v19 = vmul.f32 %v2819_v41, %v938_v60  ;;  %v977_v45 = vpop.permute.xlu1 %976 }
 0x1ff   : > { %v2030_v54 = vpop.eup %2029 }
 0x200   : > { %v899_v58 = vsel %vm898_vm2, %v2026_v36, %v895_v53  ;;  %v922_v59 = vmul.f32 %v2030_v54, %v889_v38  ;;  %vm927_vm6 = vweird.f32 %v2030_v54  ;;  %v940_v23 = vadd.f32 %v2819_v41, %v939_v19 }
 0x201   : > { %v904_v61 = vsel %vm901_vm3, %v903_v56, %v899_v58  ;;  %vm928_vm9 = vmor %vm926_vm8, %vm927_vm6  ;;  %v1738_v56 = vld [vmem:[%s2573_s15 + $0x30] sm:$0xff] }
 0x202   : > { %v923_v63 = vsub.f32 1.0, %v922_v59  ;;  %v953_v2 = vmul.f32 %v951_v55, %v904_v61  ;;  %v944_v30 = vsel %vm943_vm14, %v2819_v41, %v940_v23  ;;  %v994_v58 = vunpack.c.h.bf16 %v1738_v56 }
 0x203   : > { %v949_v35 = vsel %vm946_vm15, %v948_v31, %v944_v30 }
 0x204   : > { %v924_v14 = vmul.f32 %v2030_v54, %v923_v63  ;;  %v955_v17 = vadd.f32 %v953_v2, %v816_v50  ;;  %v960_v33 = vsub.f32 1.0, %v949_v35  ;;  %v964_v42 = vmul.f32 %v949_v35, %v2790_v7 }
 0x205   : > { %v996_v2 = vunpack.c.l.bf16 %v1740_v62 }
 0x206   : > { %v925_v5 = vadd.f32 %v2030_v54, %v924_v14  ;;  %2031 = vtanh.f32 %v955_v17 }
 0x208   : > { %v929_v28 = vsel %vm928_vm9, %v2030_v54, %v925_v5 }
 0x209   : > { %v934_v47 = vsel %vm931_vm11, %v933_v13, %v929_v28 }
 0x20a   : > { %v954_v24 = vmul.f32 %v952_v20, %v934_v47 }
 0x20c   : > { %v2032_v25 = vpop.eup %2031  ;;  %v956_v22 = vadd.f32 %v954_v24, %v819_v21 }
 0x20d   : > { %v961_v27 = vmul.f32 %v2032_v25, %v959_v3 }
 0x20e   : > { %2033 = vtanh.f32 %v956_v22  ;;  %v1739_v22 = vld [vmem:[%s2573_s15 + $0x38] sm:$0xf] }
 0x20f   : > { %v965_v32 = vadd.f32 %v963_v29, %v961_v27  ;;  %v995_v35 = vunpack.c.l.bf16 %v1739_v22 }
 0x211   : > { %v967_v36 = vsub.f32 %v965_v32, %v2786_v1 }
 0x213   : > { %v979_v39 = vmul.f32 %v972_v34, %v967_v36 }
 0x214   : > { %v2034_v38 = vpop.eup %2033 }
 0x215   : > { %v962_v40 = vmul.f32 %v2034_v38, %v960_v33  ;;  %v2853_v41 = vadd.f32 %v979_v39, %v2786_v1 }
 0x217   : > { %v966_v43 = vadd.f32 %v964_v42, %v962_v40  ;;  %v983_v49 = vpack.c.bf16 %v2853_v41, %v2853_v41 }
 0x219   : > { %v968_v44 = vsub.f32 %v966_v43, %v2790_v7  ;;  %v1004_v1 = vunpack.c.l.b16 %v983_v49 }
 0x21b   : > { %v980_v46 = vmul.f32 %v977_v45, %v968_v44 }
 0x21d   : > { %v2857_v48 = vadd.f32 %v980_v46, %v2790_v7  ;;  %v993_v7 = vunpack.c.l.bf16 %v1738_v56  ;;  %v1741_v56 = vld [vmem:[%s2573_s15 + $0x44] sm:$0xf] }
 0x21f   : > { %v1809_v51 = vpack.c.bf16 %v2857_v48, %v2853_v41  ;;  %v984_v53 = vpack.c.bf16 %v2857_v48, %v2857_v48 }
 0x221   : > { %1821 = vst [vmem:[%s2591_s26 + $0x8] sm:$0xff] %v1809_v51   ;;  %v1005_v54 = vunpack.c.l.b16 %v984_v53 }
 0x223   : > { %v1006_v55 = vpack.c.b16 %v1005_v54, %v1004_v1 }
 0x225   : > { %1016 = vmatmul.bf16.vlgmr.msrb.gmra.mxu2 %v1006_v55  ;;  %1030 = vmatmul.bf16.vlgmr.msrb.gmra.mxu3 %v1006_v55 }
 0x226   : > { %1044 = vmatmul.bf16.vlgmr.msra.gmra.mxu0 %v1006_v55 }
 0x2a3   : > { %v1045_v47 = vpop.f32.mrf.mxu0 }
 0x2a4   : > { %v1130_v30 = vadd.f32 %v2755_v52, %v1045_v47 }
 0x2a8   : > { %v1017_v59 = vpop.f32.mrf.mxu2  ;;  %v1031_v50 = vpop.f32.mrf.mxu3 }
 0x2a9   : > { %v1050_v60 = vadd.f32 %v1017_v59, %v993_v7  ;;  %v1051_v61 = vadd.f32 %v1031_v50, %v994_v58 }
 0x2ab   : > { %v1744_v63 = vmul.f32 -1.442695, %v1050_v60  ;;  %v1745_v0 = vmul.f32 -1.442695, %v1051_v61  ;;  %v1047_v46 = vpop.f32.mrf.mxu0 }
 0x2ac   : > { %v1131_v59 = vadd.f32 %v2755_v52, %v1047_v46 }
 0x2ad   : > { %2035 = vpow2.f32 %v1744_v63  ;;  %v998_v63 = vunpack.c.l.bf16 %v1741_v56 }
 0x2ae   : > { %2037 = vpow2.f32 %v1745_v0 }
 0x2b0   : > { %v1019_v6 = vpop.f32.mrf.mxu2  ;;  %v1033_v8 = vpop.f32.mrf.mxu3 }
 0x2b1   : > { %v1052_v14 = vadd.f32 %v1019_v6, %v996_v2  ;;  %v1053_v16 = vadd.f32 %v1033_v8, %v997_v4 }
 0x2b3   : > { %v2036_v10 = vpop.eup %2035  ;;  %v1746_v17 = vmul.f32 -1.442695, %v1052_v14  ;;  %v1747_v19 = vmul.f32 -1.442695, %v1053_v16 }
 0x2b4   : > { %v2038_v18 = vpop.eup %2037  ;;  %v1066_v11 = vadd.f32 1.0, %v2036_v10 }
 0x2b5   : > { %v1067_v5 = vadd.f32 1.0, %v2038_v18  ;;  %2039 = vpow2.f32 %v1746_v17 }
 0x2b6   : > { %2041 = vrcp.f32 %v1066_v11  ;;  %v1081_v24 = vand.u32 2147483648, %v1066_v11  ;;  %v1079_v25 = vand.u32 2147483647, %v1066_v11  ;;  %vm1075_vm1 = vweird.f32 %v1066_v11 }
 0x2b7   : > { %2043 = vrcp.f32 %v1067_v5  ;;  %v1096_v40 = vand.u32 2147483648, %v1067_v5  ;;  %vm1090_vm5 = vweird.f32 %v1067_v5  ;;  %v1094_v45 = vand.u32 2147483647, %v1067_v5 }
 0x2b8   : > { %2045 = vpow2.f32 %v1747_v19  ;;  %v1082_v31 = vor.u32 1.1754944e-38, %v1081_v24  ;;  %vm1080_vm3 = vcmp.eq.f32.partialorder %v1079_v25, 8.507059e+37 }
 0x2b9   : > { %v1097_v58 = vor.u32 1.1754944e-38, %v1096_v40  ;;  %vm1095_vm10 = vcmp.eq.f32.partialorder %v1094_v45, 8.507059e+37 }
 0x2bb   : > { %v2040_v9 = vpop.eup %2039 }
 0x2bc   : > { %v2042_v12 = vpop.eup %2041  ;;  %v1068_v20 = vadd.f32 1.0, %v2040_v9  ;;  %v1151_v9 = vpop.permute.xlu2 %1150 }
 0x2bd   : > { %v2044_v13 = vpop.eup %2043  ;;  %v1071_v28 = vmul.f32 %v2042_v12, %v1066_v11  ;;  %vm1076_vm0 = vweird.f32 %v2042_v12 }
 0x2be   : > { %v2046_v37 = vpop.eup %2045  ;;  %v1086_v21 = vmul.f32 %v2044_v13, %v1067_v5  ;;  %2047 = vrcp.f32 %v1068_v20  ;;  %vm1077_vm2 = vmor %vm1075_vm1, %vm1076_vm0  ;;  %vm1091_vm4 = vweird.f32 %v2044_v13  ;;  %v1111_v43 = vand.u32 2147483648, %v1068_v20 }
 0x2bf   : > { %v1072_v23 = vsub.f32 1.0, %v1071_v28  ;;  %v2868_v57 = vadd.f32 1.0, %v2046_v37  ;;  %v1109_v51 = vand.u32 2147483647, %v1068_v20  ;;  %vm2874_vm7 = vmor %vm1090_vm5, %vm1091_vm4  ;;  %vm1105_vm8 = vweird.f32 %v1068_v20 }
 0x2c0   : > { %v1087_v3 = vsub.f32 1.0, %v1086_v21  ;;  %v1112_v50 = vor.u32 1.1754944e-38, %v1111_v43 }
 0x2c1   : > { %v1073_v15 = vmul.f32 %v2042_v12, %v1072_v23  ;;  %2049 = vrcp.f32 %v2868_v57  ;;  %vm1110_vm11 = vcmp.eq.f32.partialorder %v1109_v51, 8.507059e+37  ;;  %v1126_v4 = vand.u32 2147483648, %v2868_v57 }
 0x2c2   : > { %v1088_v26 = vmul.f32 %v2044_v13, %v1087_v3  ;;  %vm1120_vm13 = vweird.f32 %v2868_v57  ;;  %v1124_v14 = vand.u32 2147483647, %v2868_v57 }
 0x2c3   : > { %v1074_v27 = vadd.f32 %v2042_v12, %v1073_v15  ;;  %v1127_v19 = vor.u32 1.1754944e-38, %v1126_v4 }
 0x2c4   : > { %v2048_v29 = vpop.eup %2047  ;;  %v1089_v33 = vadd.f32 %v2044_v13, %v1088_v26  ;;  %vm1125_vm15 = vcmp.eq.f32.partialorder %v1124_v14, 8.507059e+37  ;;  %v1156_v3 = vpop.permute.xlu2 %1155 }
 0x2c5   : > { %v1078_v32 = vsel %vm1077_vm2, %v2042_v12, %v1074_v27  ;;  %v1101_v34 = vmul.f32 %v2048_v29, %v1068_v20  ;;  %vm1106_vm6 = vweird.f32 %v2048_v29 }
 0x2c6   : > { %v1083_v36 = vsel %vm1080_vm3, %v1082_v31, %v1078_v32  ;;  %v1093_v55 = vsel %vm2874_vm7, %v2044_v13, %v1089_v33  ;;  %vm1107_vm9 = vmor %vm1105_vm8, %vm1106_vm6  ;;  %v1750_v31 = vld [vmem:[%s2573_s15 + $0x48] sm:$0xff] }
 0x2c7   : > { %v2050_v38 = vpop.eup %2049  ;;  %v1102_v39 = vsub.f32 1.0, %v1101_v34  ;;  %v1132_v42 = vmul.f32 %v1130_v30, %v1083_v36  ;;  %v1098_v62 = vsel %vm1095_vm10, %v1097_v58, %v1093_v55  ;;  %v1172_v32 = vunpack.c.l.bf16 %v1750_v31 }
 0x2c8   : > { %v1116_v44 = vmul.f32 %v2050_v38, %v2868_v57  ;;  %vm1121_vm12 = vweird.f32 %v2050_v38  ;;  %v1138_v8 = vsub.f32 1.0, %v1098_v62  ;;  %v1142_v18 = vmul.f32 %v1098_v62, %v2853_v41 }
 0x2c9   : > { %v1103_v49 = vmul.f32 %v2048_v29, %v1102_v39  ;;  %v1134_v1 = vadd.f32 %v1132_v42, %v995_v35  ;;  %vm1122_vm14 = vmor %vm1120_vm13, %vm1121_vm12  ;;  %v1752_v35 = vld [vmem:[%s2573_s15 + $0x54] sm:$0xff]  ;;  %v1173_v33 = vunpack.c.h.bf16 %v1750_v31 }
 0x2ca   : > { %v1117_v54 = vsub.f32 1.0, %v1116_v44 }
 0x2cb   : > { %v1104_v7 = vadd.f32 %v2048_v29, %v1103_v49  ;;  %2051 = vtanh.f32 %v1134_v1  ;;  %v1176_v49 = vunpack.c.h.bf16 %v1752_v35 }
 0x2cc   : > { %v1118_v60 = vmul.f32 %v2050_v38, %v1117_v54 }
 0x2cd   : > { %v1108_v61 = vsel %vm1107_vm9, %v2048_v29, %v1104_v7 }
 0x2ce   : > { %v1113_v0 = vsel %vm1110_vm11, %v1112_v50, %v1108_v61  ;;  %v1119_v2 = vadd.f32 %v2050_v38, %v1118_v60 }
 0x2cf   : > { %v1133_v6 = vmul.f32 %v1131_v59, %v1113_v0 }
 0x2d0   : > { %v1123_v11 = vsel %vm1122_vm14, %v2050_v38, %v1119_v2  ;;  %v1175_v38 = vunpack.c.l.bf16 %v1752_v35 }
 0x2d1   : > { %v2052_v16 = vpop.eup %2051  ;;  %v1135_v10 = vadd.f32 %v1133_v6, %v998_v63  ;;  %v1128_v12 = vsel %vm1125_vm15, %v1127_v19, %v1123_v11  ;;  %v1751_v63 = vld [vmem:[%s2573_s15 + $0x50] sm:$0xf] }
 0x2d2   : > { %v1140_v17 = vmul.f32 %v2052_v16, %v1138_v8  ;;  %v1139_v13 = vsub.f32 1.0, %v1128_v12  ;;  %v1143_v47 = vmul.f32 %v1128_v12, %v2857_v48 }
 0x2d3   : > { %2053 = vtanh.f32 %v1135_v10  ;;  %v1174_v10 = vunpack.c.l.bf16 %v1751_v63 }
 0x2d4   : > { %v1144_v5 = vadd.f32 %v1142_v18, %v1140_v17 }
 0x2d6   : > { %v1146_v20 = vsub.f32 %v1144_v5, %v2853_v41 }
 0x2d8   : > { %v1158_v37 = vmul.f32 %v1151_v9, %v1146_v20 }
 0x2d9   : > { %v2054_v28 = vpop.eup %2053 }
 0x2da   : > { %v1141_v21 = vmul.f32 %v2054_v28, %v1139_v13  ;;  %v2889_v57 = vadd.f32 %v1158_v37, %v2853_v41 }
 0x2dc   : > { %v1145_v23 = vadd.f32 %v1143_v47, %v1141_v21  ;;  %v1162_v22 = vpack.c.bf16 %v2889_v57, %v2889_v57 }
 0x2de   : > { %v1147_v24 = vsub.f32 %v1145_v23, %v2857_v48  ;;  %v1183_v41 = vunpack.c.l.b16 %v1162_v22 }
 0x2e0   : > { %v1159_v15 = vmul.f32 %v1156_v3, %v1147_v24 }
 0x2e2   : > { %v2893_v25 = vadd.f32 %v1159_v15, %v2857_v48 }
 0x2e4   : > { %v1814_v26 = vpack.c.bf16 %v2893_v25, %v2889_v57  ;;  %v1163_v27 = vpack.c.bf16 %v2893_v25, %v2893_v25 }
 0x2e6   : > { %1822 = vst [vmem:[%s2591_s26 + $0x10] sm:$0xff] %v1814_v26   ;;  %v1184_v29 = vunpack.c.l.b16 %v1163_v27 }
 0x2e8   : > { %v1185_v30 = vpack.c.b16 %v1184_v29, %v1183_v41  ;;  %v1753_v29 = vld [vmem:[%s2573_s15 + $0x5c] sm:$0xf] }
 0x2e9   : > { %v1177_v35 = vunpack.c.l.bf16 %v1753_v29 }
 0x2ea   : > { %1195 = vmatmul.bf16.vlgmr.msra.gmra.mxu1 %v1185_v30  ;;  %1209 = vmatmul.bf16.vlgmr.msra.gmra.mxu2 %v1185_v30 }
 0x2eb   : > { %1223 = vmatmul.bf16.vlgmr.msra.gmra.mxu3 %v1185_v30 }
 0x367   : > { %v1196_v48 = vpop.f32.mrf.mxu1 }
 0x368   : > { %v1229_v34 = vadd.f32 %v1196_v48, %v1172_v32 }
 0x36a   : > { %v1756_v36 = vmul.f32 -1.442695, %v1229_v34 }
 0x36c   : > { %2055 = vpow2.f32 %v1756_v36 }
 0x36d   : > { %v1210_v39 = vpop.f32.mrf.mxu2 }
 0x36e   : > { %v1230_v40 = vadd.f32 %v1210_v39, %v1173_v33  ;;  %v1224_v0 = vpop.f32.mrf.mxu3 }
 0x36f   : > { %v1198_v42 = vpop.f32.mrf.mxu1  ;;  %v1309_v5 = vadd.f32 %v2755_v52, %v1224_v0 }
 0x370   : > { %v1757_v43 = vmul.f32 -1.442695, %v1230_v40  ;;  %v1231_v44 = vadd.f32 %v1198_v42, %v1175_v38 }
 0x372   : > { %v2056_v45 = vpop.eup %2055  ;;  %2057 = vpow2.f32 %v1757_v43  ;;  %v1758_v46 = vmul.f32 -1.442695, %v1231_v44 }
 0x373   : > { %v1245_v51 = vadd.f32 1.0, %v2056_v45 }
 0x374   : > { %2059 = vpow2.f32 %v1758_v46 }
 0x375   : > { %2061 = vrcp.f32 %v1245_v51  ;;  %v1212_v53 = vpop.f32.mrf.mxu2  ;;  %v1260_v61 = vand.u32 2147483648, %v1245_v51  ;;  %v1258_v4 = vand.u32 2147483647, %v1245_v51  ;;  %vm1254_vm1 = vweird.f32 %v1245_v51 }
 0x376   : > { %v1232_v1 = vadd.f32 %v1212_v53, %v1176_v49  ;;  %v1226_v30 = vpop.f32.mrf.mxu3 }
 0x377   : > { %v1261_v17 = vor.u32 1.1754944e-38, %v1260_v61  ;;  %vm1259_vm3 = vcmp.eq.f32.partialorder %v1258_v4, 8.507059e+37  ;;  %v1310_v33 = vadd.f32 %v2755_v52, %v1226_v30 }
 0x378   : > { %v2058_v54 = vpop.eup %2057  ;;  %v1759_v55 = vmul.f32 -1.442695, %v1232_v1 }
 0x379   : > { %v1246_v56 = vadd.f32 1.0, %v2058_v54 }
 0x37a   : > { %v2060_v7 = vpop.eup %2059  ;;  %2063 = vpow2.f32 %v1759_v55 }
 0x37b   : > { %v2062_v58 = vpop.eup %2061  ;;  %2065 = vrcp.f32 %v1246_v56  ;;  %v1247_v50 = vadd.f32 1.0, %v2060_v7  ;;  %v1275_v13 = vand.u32 2147483648, %v1246_v56  ;;  %v1273_v37 = vand.u32 2147483647, %v1246_v56  ;;  %v1330_v7 = vpop.permute.xlu0 %1329 }
 0x37c   : > { %v1250_v59 = vmul.f32 %v2062_v58, %v1245_v51  ;;  %vm1255_vm0 = vweird.f32 %v2062_v58  ;;  %vm1269_vm5 = vweird.f32 %v1246_v56 }
 0x37d   : > { %2067 = vrcp.f32 %v1247_v50  ;;  %vm1256_vm2 = vmor %vm1254_vm1, %vm1255_vm0  ;;  %v1290_v24 = vand.u32 2147483648, %v1247_v50  ;;  %v1288_v22 = vand.u32 2147483647, %v1247_v50  ;;  %v1276_v26 = vor.u32 1.1754944e-38, %v1275_v13 }
 0x37e   : > { %v1251_v60 = vsub.f32 1.0, %v1250_v59  ;;  %vm1274_vm8 = vcmp.eq.f32.partialorder %v1273_v37, 8.507059e+37  ;;  %vm1284_vm9 = vweird.f32 %v1247_v50 }
 0x37f   : > { %v1291_v34 = vor.u32 1.1754944e-38, %v1290_v24  ;;  %vm1289_vm11 = vcmp.eq.f32.partialorder %v1288_v22, 8.507059e+37 }
 0x380   : > { %v2064_v62 = vpop.eup %2063  ;;  %v1252_v2 = vmul.f32 %v2062_v58, %v1251_v60 }
 0x381   : > { %v2066_v6 = vpop.eup %2065  ;;  %v2905_v8 = vadd.f32 1.0, %v2064_v62 }
 0x382   : > { %v1265_v14 = vmul.f32 %v2066_v6, %v1246_v56  ;;  %v1253_v16 = vadd.f32 %v2062_v58, %v1252_v2  ;;  %vm1270_vm4 = vweird.f32 %v2066_v6  ;;  %v1335_v2 = vpop.permute.xlu1 %1334 }
 0x383   : > { %2069 = vrcp.f32 %v2905_v8  ;;  %v2068_v18 = vpop.eup %2067  ;;  %vm1271_vm6 = vmor %vm1269_vm5, %vm1270_vm4  ;;  %v1305_v42 = vand.u32 2147483648, %v2905_v8  ;;  %vm1299_vm13 = vweird.f32 %v2905_v8  ;;  %v1303_v46 = vand.u32 2147483647, %v2905_v8 }
 0x384   : > { %v1266_v11 = vsub.f32 1.0, %v1265_v14  ;;  %v1257_v19 = vsel %vm1256_vm2, %v2062_v58, %v1253_v16  ;;  %v1280_v12 = vmul.f32 %v2068_v18, %v1247_v50  ;;  %vm1285_vm7 = vweird.f32 %v2068_v18 }
 0x385   : > { %v1262_v9 = vsel %vm1259_vm3, %v1261_v17, %v1257_v19  ;;  %vm1286_vm10 = vmor %vm1284_vm9, %vm1285_vm7  ;;  %v1306_v54 = vor.u32 1.1754944e-38, %v1305_v42  ;;  %vm1304_vm15 = vcmp.eq.f32.partialorder %v1303_v46, 8.507059e+37 }
 0x386   : > { %v1267_v20 = vmul.f32 %v2066_v6, %v1266_v11  ;;  %v1311_v28 = vmul.f32 %v1309_v5, %v1262_v9  ;;  %v1281_v21 = vsub.f32 1.0, %v1280_v12 }
 0x388   : > { %v1268_v47 = vadd.f32 %v2066_v6, %v1267_v20  ;;  %v1313_v23 = vadd.f32 %v1311_v28, %v1174_v10  ;;  %v1282_v15 = vmul.f32 %v2068_v18, %v1281_v21 }
 0x389   : > { %v2070_v3 = vpop.eup %2069 }
 0x38a   : > { %v1272_v27 = vsel %vm1271_vm6, %v2066_v6, %v1268_v47  ;;  %2071 = vtanh.f32 %v1313_v23  ;;  %v1295_v41 = vmul.f32 %v2070_v3, %v2905_v8  ;;  %v1283_v31 = vadd.f32 %v2068_v18, %v1282_v15 }
 0x38b   : > { %v1277_v32 = vsel %vm1274_vm8, %v1276_v26, %v1272_v27  ;;  %vm1300_vm12 = vweird.f32 %v2070_v3 }
 0x38c   : > { %v1296_v48 = vsub.f32 1.0, %v1295_v41  ;;  %v1287_v36 = vsel %vm1286_vm10, %v2068_v18, %v1283_v31  ;;  %v1317_v40 = vsub.f32 1.0, %v1277_v32  ;;  %v1321_v51 = vmul.f32 %v1277_v32, %v2889_v57  ;;  %vm1301_vm14 = vmor %vm1299_vm13, %vm1300_vm12 }
 0x38d   : > { %v1292_v39 = vsel %vm1289_vm11, %v1291_v34, %v1287_v36 }
 0x38e   : > { %v1297_v38 = vmul.f32 %v2070_v3, %v1296_v48  ;;  %v1312_v43 = vmul.f32 %v1310_v33, %v1292_v39 }
 0x390   : > { %v2072_v44 = vpop.eup %2071  ;;  %v1298_v45 = vadd.f32 %v2070_v3, %v1297_v38  ;;  %v1314_v53 = vadd.f32 %v1312_v43, %v1177_v35 }
 0x391   : > { %v1319_v49 = vmul.f32 %v2072_v44, %v1317_v40 }
 0x392   : > { %v1302_v1 = vsel %vm1301_vm14, %v2070_v3, %v1298_v45  ;;  %2073 = vtanh.f32 %v1314_v53 }
 0x393   : > { %v1323_v52 = vadd.f32 %v1321_v51, %v1319_v49  ;;  %v1307_v56 = vsel %vm1304_vm15, %v1306_v54, %v1302_v1 }
 0x394   : > { %v1318_v59 = vsub.f32 1.0, %v1307_v56  ;;  %v1322_v62 = vmul.f32 %v1307_v56, %v2893_v25 }
 0x395   : > { %v1325_v55 = vsub.f32 %v1323_v52, %v2889_v57 }
 0x397   : > { %v1337_v58 = vmul.f32 %v1330_v7, %v1325_v55 }
 0x398   : > { %v2074_v50 = vpop.eup %2073 }
 0x399   : > { %v1339_v60 = vadd.f32 %v1337_v58, %v2889_v57  ;;  %v1320_v61 = vmul.f32 %v2074_v50, %v1318_v59 }
 0x39b   : > { %1346 = vst [vmem:[#allocation2] sm:$0xff] %v1339_v60  ;;  %v1324_v63 = vadd.f32 %v1322_v62, %v1320_v61 }
 0x39d   : > { %v1326_v0 = vsub.f32 %v1324_v63, %v2893_v25 }
 0x39f   : > { %v1338_v4 = vmul.f32 %v1335_v2, %v1326_v0 }
 0x3a1   : > { %v1340_v6 = vadd.f32 %v1338_v4, %v2893_v25  ;;  %1351 = sbr.rel (%p1762_p1) target bundleno = 936 (0x3a8), region = 64 }
 0x3a3   : > { %v1819_v8 = vpack.c.bf16 %v1340_v6, %v1339_v60  ;;  %1347 = vst [vmem:[#allocation2 + $0x8] sm:$0xff] %v1340_v6 }
 0x3a5   : > { %1823 = vst [vmem:[%s2591_s26 + $0x18] sm:$0xff] %v1819_v8  }
 0x3a6   : > { %1352 = vst [vmem:[%s2593_s13] sm:$0xff] %v1339_v60 }
 0x3a7   : > { %1353 = vst [vmem:[%s2593_s13 + $0x8] sm:$0xff] %v1340_v6 }
 0x3a8 PF: > { %s1355_s11 = scalar_lea.sflag [#allocation5], %s2561_s14  ;;  %s2928_s17 = scalar_lea.sflag [#allocation13], %s404_s29 }
 0x3a9   : > { %s3071_s12 = sld [smem:[#allocation31_spill]]  ;;  %s1799_s5 = sshll.u32 %s2255_s27, 4 }
 0x3aa   : > { %s1385_s9 = sshll.u32 %s2591_s26, 4  ;;  %s3073_s19 = sld [smem:[#allocation43_spill]]  ;;  %s1386_s9 = int_to_ptr.vmem [resolvable:$true] %s1385_s9 }
 0x3ab   : > { %s2291_s29 = smov 128   ;;  %s2292_s24 = smov 256  }
 0x3ac   : > { %1852 = sst [smem:[#allocation19]] (%p2464_p7), %s2291_s29  ;;  %s2293_s27 = smov 2  }
 0x3ad   : > { %1853 = sst [smem:[#allocation19 + $0x1]] (%p2464_p7), %s2292_s24  ;;  %s2294_s3 = smov 64  }
 0x3ae   : > { %1854 = sst [smem:[#allocation19 + $0x2]] (%p2464_p7), %s2293_s27  ;;  %s2295_s16 = smov 4  }
 0x3af   : > { %s1766_s0 = sshll.u32 %s3071_s12, 1  ;;  %1855 = sst [smem:[#allocation19 + $0x3]] (%p2464_p7), %s2294_s3 }
 0x3b0   : > { %s1372_s21 = sadd.s32 %s1799_s5, %s1766_s0  ;;  %1856 = sst [smem:[#allocation19 + $0x4]] (%p2464_p7), %s2294_s3 }
 0x3b1   : > { %s1768_s20 = sshll.u32 %s1372_s21, 2  ;;  %1857 = sst [smem:[#allocation19 + $0x5]] (%p2464_p7), %s2295_s16 }
 0x3b2   : > { %s1374_s18 = scalar_lea.hbm %s3073_s19, %s1768_s20  ;;  %s2296_s26 = smov [#allocation18]  }
 0x3b3   : > { %s1387_s15 = sshll.u32 %s1374_s18, 4  ;;  %s2297_s6 = smov 0   ;;  %s1388_s15 = int_to_ptr.hbm [resolvable:$true] %s1387_s15 }
 0x3b4   : > { %1858 = dma.general (%p2464_p7), %s1386_s9, 512, %s1388_s15, %s1355_s11, %s2296_s26, [#allocation19], %s2297_s6, 0  }
 0x3b5   : > { %s1800_s0 = sshll.u32 %s3071_s12, 4  ;;  %s1415_s5 = sshll.u32 %s2593_s13, 4  ;;  %s1416_s5 = int_to_ptr.vmem [resolvable:$true] %s1415_s5 }
 0x3b6   : > { %s3075_s10 = sld [smem:[#allocation44_spill]] }
 0x3bc   : > { %s1414_s14 = scalar_lea.hbm %s3075_s10, %s1800_s0  ;;  %s2153_s9 = scalar_lea.hbm %s3075_s10, 32 }
 0x3bd   : > { %s1417_s19 = sshll.u32 %s1414_s14, 4  ;;  %s1418_s19 = int_to_ptr.hbm [resolvable:$true] %s1417_s19 }
 0x3be   : > { %s2147_s18 = sshra.s32 %s1418_s19, 4  ;;  %s2148_s18 = int_to_ptr.hbm [resolvable:$true] %s2147_s18 }
 0x3bf   : > { %s2149_s29 = scalar_lea.hbm %s2148_s18, 16  ;;  %p2154_p7 = scmp.lt.s32.totalorder %s2148_s18, %s3075_s10 }
 0x3c0   : > { %p2150_p8 = scmp.ne.s32.totalorder %s2148_s18, %s2149_s29  ;;  %p2155_p4 = scmp.lt.s32.totalorder %s2153_s9, %s2149_s29 }
 0x3c2   : > { %p2151_p9 = pnand %p2150_p8, %p2471_p2  ;;  %p2156_p3 = por %p2155_p4, %p2154_p7 }
 0x3c4   : > { %p2152_p0 = pneg %p2151_p9 }
 0x3c6   : > { %p2157_p5 = pnand %p2156_p3, %p2152_p0 }
 0x3c8   : > { %2160 = shalt.err (!%p2157_p5)
}
 0x3c9   : > { %s2298_s15 = smov 128   ;;  %s2299_s24 = smov 8  }
 0x3ca   : > { %1859 = dma.vmem_to_hbm [thread:$0]  (%p2471_p2), %s1416_s5, 256, %s1418_s19, %s2928_s17, %s2298_s15, %s2298_s15, %s2299_s24  }
 0x3cb PF: > { %s3076_s27 = sld [smem:[#allocation29_spill]]  ;;  %p1875_p12 = scmp.ge.s32.totalorder %s2271_s7, 2 }
 0x3cd   : > { %p1867_p13 = pnand %p1875_p12, %p2478_p11 }
 0x3cf   : > { %p1868_p10 = pneg %p1867_p13 }
 0x3d1   : > { %s1432_s16 = sand.u32 1, %s3076_s27  }
 0x3d2   : > { %s1433_s26 = scalar_lea.sflag [#allocation5], %s1432_s16 }
 0x3d3   : > { %2222 = dma.done.wait (%p1868_p10), %s1433_s26, 512  }
 0x3d4   : > { %2224 = vsyncadd (%p1868_p10), %s1433_s26, 4294966784  ;;  %s3078_s6 = sld [smem:[#allocation28_spill]]  ;;  %p1870_p1 = pnand %p1875_p12, %p2485_p6 }
 0x3d6   : > { %p1871_p8 = pneg %p1870_p1 }
 0x3da   : > { %s1442_s21 = sand.u32 1, %s3078_s6  }
 0x3db   : > { %s1443_s8 = scalar_lea.sflag [#allocation13], %s1442_s21 }
 0x3dc   : > { %2226 = dma.done.wait (%p1871_p8), %s1443_s8, 256  }
 0x3dd   : > { %2228 = vsyncadd (%p1871_p8), %s1443_s8, 4294967040  ;;  %s30_s7 = sadd.s32 1, %s2271_s7   ;;  %s3080_s17 = sld [smem:[#allocation35_spill]] }
 0x3de   : > { %p27_p2 = scmp.ge.s32.totalorder %s30_s7, 8   ;;  %s3081_s5 = sld [smem:[#allocation30_spill]] }
 0x3df   : > { %s3082_s26 = sld [smem:[#allocation36_spill]]  ;;  %s3086_s21 = smov %s2235_s22 }
 0x3e0   : > { %s3083_s27 = sld [smem:[#allocation32_spill]]  ;;  %s3087_s22 = smov %s2239_s23 }
 0x3e1   : > { %s3084_s29 = sld [smem:[#allocation33_spill]]  ;;  %s3089_s24 = smov %s2247_s25 }
 0x3e2   : > { %s3085_s20 = sld [smem:[#allocation34_spill]]  ;;  %s3091_s28 = smov %s2267_s30 }
 0x3e3   : > { %s3088_s23 = smov %s3080_s17 }
 0x3e4   : > { %s3090_s25 = smov %s3081_s5  ;;  %29 = sbr.rel (!%p27_p2) target bundleno = 19 (0x13), region = 162 }
 0x3e8   : > { %s3092_s30 = smov %s3085_s20 }
 0x3e9   :  { %1449 = vsyncpa [#allocation4], 1 }
 0x3ea   :  { %1451 = vsyncpa [#allocation4 + $0x1], 1 }
 0x3eb   :  { %1452 = vsyncpa [#allocation7], 1 }
 0x3ec   :  { %1454 = vsyncpa [#allocation7 + $0x1], 1 }
 0x3ed   :  { %1455 = vsyncpa [#allocation10], 1 }
 0x3ee   :  { %1456 = vsyncpa [#allocation5], 1 }
 0x3ef   :  { %1458 = vsyncpa [#allocation5 + $0x1], 1 }
 0x3f0   :  { %1459 = vsyncpa [#allocation13], 1 }
 0x3f1   :  { %1461 = vsyncpa [#allocation13 + $0x1], 1 }

</bundles_post_ra>
